<compile_context>
chip_gen: v5e
topology: v5e:2x2
jax: 0.10.0
libtpu: 0.0.40
codegen_flags: <defaults>
</compile_context>

<pallas_src>
import functools

import jax
import jax.numpy as jnp
from jax.experimental import pallas as pl
from jax.experimental.pallas import tpu as pltpu


_LANES = 128
_ROWS = 16   # block row granularity: multiple of the sublane tile for f32 AND bf16


def _round_up(x, m):
    return ((x + m - 1) // m) * m


def _softmax_last(x):
    m = jnp.max(x, axis=-1, keepdims=True)
    p = jnp.exp(x - m)
    return p / jnp.sum(p, axis=-1, keepdims=True)


def _hard_onehot_last(y):
    """one_hot(argmax(y, -1)); first-occurrence tie-break (ties are measure-zero
    because Gumbel noise has already been added)."""
    n, k = y.shape
    m = jnp.max(y, axis=-1, keepdims=True)
    iota = jax.lax.broadcasted_iota(jnp.int32, (n, k), 1)
    first = jnp.min(jnp.where(y == m, iota, k), axis=-1, keepdims=True)
    return (iota == first).astype(jnp.float32)


def _cross_attention_kernel(
    slab_ref, uctx_ref, ictx_ref,
    au_ref, btu_ref, su_ref, stu_ref, mu_ref,
    ai_ref, bti_ref, si_ref, sti_ref, mi_ref,
    out_ref,
    *, d, ku, ki, out_pad,
):
    f32 = jnp.float32
    slab = slab_ref[...]                        # (BN, SLAB_W) packed per-row operands

    # Static lane offsets inside the packed slab (see wrapper packing order).
    ub_off = 2 * d
    ib_off = ub_off + ku
    gu_off = ib_off + ki
    gi_off = gu_off + ku

    def one_side(ctx_ref, a_ref, bt_ref, s_ref, st_ref, m_ref, bias_off, g_off, k):
        ctx = ctx_ref[...].astype(f32)                                     # (BN, K*E)
        # Linear(D,E) fused with "tile transformed query over the K keys" (MXU).
        q_tiled = jnp.dot(slab, a_ref[...], preferred_element_type=f32) + bt_ref[...]
        # energy[n,k] = sum_e q[n,e] * ctx[n,k,e]: lane-dense VPU multiply followed by
        # a 0/1 "sum over e within each key group" matmul on the MXU.
        energy = jnp.dot(q_tiled * ctx, s_ref[...], preferred_element_type=f32)
        energy = energy + slab[:, bias_off:bias_off + k]       # additive -1e20 mask
        attn = _softmax_last(energy)                                       # (BN, K)
        # gumbel_softmax(hard=True): forward value = one_hot(argmax(attn + g)).
        hard = _hard_onehot_last(attn + slab[:, g_off:g_off + k])          # (BN, K)
        # bmm(one_hot, context): broadcast one-hot over E (MXU), select (VPU),
        # sum over keys (0/1 matmul on the MXU).
        sel = jnp.dot(hard, st_ref[...], preferred_element_type=f32) * ctx
        tensor = jnp.dot(sel, m_ref[...], preferred_element_type=f32)      # (BN, E)
        return hard, tensor

    # user attention: query = transform(item_query), keys/values = user_context.
    u_hard, user_tensor = one_side(uctx_ref, au_ref, btu_ref, su_ref, stu_ref, mu_ref,
                                   ub_off, gu_off, ku)
    # item attention: query = transform(user_query), keys/values = item_context.
    i_hard, item_tensor = one_side(ictx_ref, ai_ref, bti_ref, si_ref, sti_ref, mi_ref,
                                   ib_off, gi_off, ki)

    pred = jax.nn.sigmoid(user_tensor * item_tensor)                       # (BN, E)

    # Single lane-dense output slab: [pred | user one-hot | item one-hot | 0-pad].
    pieces = [pred, u_hard, i_hard]
    if out_pad:
        pieces.append(jnp.zeros((pred.shape[0], out_pad), f32))
    out_ref[...] = jnp.concatenate(pieces, axis=-1)


def _choose_tiling(n, slab_w, ke_u, ke_i, out_w, ctx_itemsize):
    """Batch-tile height BN and grid length.

    VMEM accounting is lane-padding aware (minor dims pad to 128 lanes) and also
    budgets the in-kernel f32 temporaries (ctx upcast, tiled query, energy product,
    broadcast one-hot, selected product per side) on top of the double-buffered
    pipeline blocks.  Guarantees >= 2 grid steps when the batch is big enough so both
    v7x TensorCores get work.
    """
    lanes = lambda w: _round_up(w, _LANES)
    # Double-buffered pipeline blocks (inputs + output), bytes per row.
    stream_row = (lanes(slab_w) * 4
                  + (lanes(ke_u) + lanes(ke_i)) * ctx_itemsize
                  + lanes(out_w) * 4)
    # In-kernel f32 temporaries per row (conservative: assumes no buffer reuse).
    temp_row = 20 * (lanes(ke_u) + lanes(ke_i)) + 4 * lanes(out_w) + 2048
    per_row = 2 * stream_row + temp_row

    budget = 30 * 1024 * 1024
    bn_cap = budget // per_row
    bn_cap = max(_ROWS, min(4096, (bn_cap // _ROWS) * _ROWS))

    n_rows = _round_up(max(n, 1), _ROWS)
    min_steps = 2 if n_rows >= 2 * _ROWS else 1          # keep both v7x TCs busy
    steps = max(pl.cdiv(n_rows, bn_cap), min_steps)
    bn = _round_up(pl.cdiv(n_rows, steps), _ROWS)
    return bn, steps, bn * steps, per_row


@functools.partial(jax.jit, static_argnames=("context_dtype",))
def cross_attention_forward(
    user_query, item_query, user_context, item_context,
    user_key_mask, item_key_mask, w, b, g_user, g_item,
    *, context_dtype=jnp.bfloat16,
):
    n, d = user_query.shape
    _, ku, e = user_context.shape
    _, ki, _ = item_context.shape
    ke_u, ke_i = ku * e, ki * e
    f32 = jnp.float32

    slab_used = 2 * d + 2 * ku + 2 * ki
    slab_w = _round_up(slab_used, _LANES)
    out_w = _round_up(e + ku + ki, _LANES)

    ctx_itemsize = jnp.dtype(context_dtype).itemsize
    bn, steps, n_pad, per_row = _choose_tiling(n, slab_w, ke_u, ke_i, out_w, ctx_itemsize)

    # Key masks -> additive -1e20 biases.  Adding -1e20 in f32 is numerically
    # identical to masked_fill(-1e20) (finite energies are below the ulp of 1e20).
    u_bias = jnp.where(user_key_mask.astype(f32) > 0.5, -1e20, 0.0).astype(f32)
    i_bias = jnp.where(item_key_mask.astype(f32) > 0.5, -1e20, 0.0).astype(f32)

    # Packed lane-dense per-row slab: [uq | iq | ubias | ibias | gu | gi | 0-pad].
    slab = jnp.concatenate(
        [user_query.astype(f32), item_query.astype(f32),
         u_bias, i_bias, g_user.astype(f32), g_item.astype(f32),
         jnp.zeros((n, slab_w - slab_used), f32)], axis=1)

    # Lane-dense flattened contexts (N, K*E); free reshape, optional bf16 cast
    # (halves the dominant HBM stream; in-kernel math stays f32).
    uctx = user_context.reshape(n, ke_u).astype(context_dtype)
    ictx = item_context.reshape(n, ke_i).astype(context_dtype)

    def pad_rows(x):
        p = n_pad - x.shape[0]
        return x if p == 0 else jnp.pad(x, ((0, p), (0, 0)))

    slab, uctx, ictx = pad_rows(slab), pad_rows(uctx), pad_rows(ictx)

    # ---- constant weight-embedding / 0-1 matrices (tiny; resident in VMEM) ----
    w32 = w.astype(f32)                       # (D, E); transform(x) = x @ W + b
    b32 = b.astype(f32).reshape(1, e)

    def side_consts(q_off, k):
        # (slab @ A)[n, kk*E + ee] == (query @ W)[n, ee] for every key kk.
        a = jnp.zeros((slab_w, k * e), f32).at[q_off:q_off + d, :].set(
            jnp.tile(w32, (1, k)))
        bt = jnp.tile(b32, (1, k))                               # (1, K*E)
        s = jnp.repeat(jnp.eye(k, dtype=f32), e, axis=0)         # (K*E, K) sum over e
        st = s.T                                                 # (K, K*E) bcast key
        m = jnp.tile(jnp.eye(e, dtype=f32), (k, 1))              # (K*E, E) sum over k
        return a, bt, s, st, m

    # user-attention side: query = transform(item_query) -> item_query lanes [d, 2d)
    au, btu, su, stu, mu = side_consts(d, ku)
    # item-attention side: query = transform(user_query) -> user_query lanes [0, d)
    ai, bti, si, sti, mi = side_consts(0, ki)

    const_bytes = 4 * sum(x.size for x in (au, btu, su, stu, mu, ai, bti, si, sti, mi))
    vmem_limit = per_row * bn + 2 * const_bytes + 8 * 1024 * 1024
    vmem_limit = int(min(max(vmem_limit, 32 * 1024 * 1024), 44 * 1024 * 1024))

    def row_spec(width):
        return pl.BlockSpec((bn, width), lambda i: (i, 0))

    def rep_spec(shape):
        return pl.BlockSpec(shape, lambda i: (0, 0))

    grid_spec = pltpu.PrefetchScalarGridSpec(
        num_scalar_prefetch=0,
        grid=(steps,),
        in_specs=[
            row_spec(slab_w), row_spec(ke_u), row_spec(ke_i),
            rep_spec(au.shape), rep_spec(btu.shape), rep_spec(su.shape),
            rep_spec(stu.shape), rep_spec(mu.shape),
            rep_spec(ai.shape), rep_spec(bti.shape), rep_spec(si.shape),
            rep_spec(sti.shape), rep_spec(mi.shape),
        ],
        out_specs=row_spec(out_w),
    )

    kernel = functools.partial(
        _cross_attention_kernel,
        d=d, ku=ku, ki=ki, out_pad=out_w - (e + ku + ki))

    packed = pl.pallas_call(
        kernel,
        out_shape=jax.ShapeDtypeStruct((n_pad, out_w), f32),
        grid_spec=grid_spec,
        compiler_params=pltpu.CompilerParams(
            dimension_semantics=("parallel",),   # shards batch tiles on v7x's 2 TCs
            vmem_limit_bytes=vmem_limit,
        ),
    )(slab, uctx, ictx, au, btu, su, stu, mu, ai, bti, si, sti, mi)

    # Free wrapper-side slicing: split the packed slab, re-add the size-1 query dim,
    # drop batch padding.
    predicted = packed[:n, None, 0:e]
    user_weights = packed[:n, None, e:e + ku]
    item_weights = packed[:n, None, e + ku:e + ku + ki]
    return predicted, user_weights, item_weights


def _reference_forward(uq, iq, uctx, ictx, umask, imask, W, bias, gu, gi):
    """Pure-JAX reference of the Train-mode forward (for correctness checking)."""
    hp = jax.lax.Precision.HIGHEST
    item_q = jnp.dot(iq, W, precision=hp) + bias
    user_q = jnp.dot(uq, W, precision=hp) + bias

    def attn(q, ctx, mask):
        energy = jnp.einsum('ne,nke->nk', q, ctx, precision=hp)
        energy = jnp.where(mask > 0.5, -1e20, energy)
        return jax.nn.softmax(energy, axis=-1)

    u_w = attn(item_q, uctx, umask)
    i_w = attn(user_q, ictx, imask)
    u_hard = jax.nn.one_hot(jnp.argmax(u_w + gu, axis=-1), uctx.shape[1], dtype=jnp.float32)
    i_hard = jax.nn.one_hot(jnp.argmax(i_w + gi, axis=-1), ictx.shape[1], dtype=jnp.float32)
    ut = jnp.einsum('nk,nke->ne', u_hard, uctx, precision=hp)
    it = jnp.einsum('nk,nke->ne', i_hard, ictx, precision=hp)
    pred = jax.nn.sigmoid(ut * it)
    return pred[:, None, :], u_hard[:, None, :], i_hard[:, None, :]


if __name__ == "__main__":
    # Small shapes consistent with the module.
    N = 2            # batch
    D = 32           # embed_dim
    E = 32           # sentence_embed_dim
    K = 8            # key_len (num reviews)

    key = jax.random.PRNGKey(0)
    k_uq, k_iq, k_uc, k_ic, k_w, k_b, k_gu, k_gi = jax.random.split(key, 8)

    user_query = jax.random.normal(k_uq, (N, D), dtype=jnp.float32)
    item_query = jax.random.normal(k_iq, (N, D), dtype=jnp.float32)
    user_context = jax.random.normal(k_uc, (N, K, E), dtype=jnp.float32)
    item_context = jax.random.normal(k_ic, (N, K, E), dtype=jnp.float32)

    # Mask the last two key positions of every batch element (1.0 == masked).
    key_iota = jnp.arange(K)[None, :]
    user_key_mask = (key_iota >= K - 2).astype(jnp.float32).repeat(N, axis=0)
    item_key_mask = (key_iota >= K - 2).astype(jnp.float32).repeat(N, axis=0)

    # Deterministic parameters for transform = Linear(D, E)  (stored as x @ W + b).
    W = 0.02 * jax.random.normal(k_w, (D, E), dtype=jnp.float32)
    bias = 0.01 * jax.random.normal(k_b, (1, E), dtype=jnp.float32)

    # Deterministic Gumbel noise used by gumbel_softmax(hard=True).
    g_user = jax.random.gumbel(k_gu, (N, K), dtype=jnp.float32)
    g_item = jax.random.gumbel(k_gi, (N, K), dtype=jnp.float32)

    results = {}
    for tag, ctx_dtype in (("bf16", jnp.bfloat16), ("f32", jnp.float32)):
        predicted, user_weights, item_weights = cross_attention_forward(
            user_query, item_query, user_context, item_context,
            user_key_mask, item_key_mask, W, bias, g_user, g_item,
            context_dtype=ctx_dtype,
        )
        jax.block_until_ready((predicted, user_weights, item_weights))
        assert predicted.shape == (N, 1, E)
        assert user_weights.shape == (N, 1, K)
        assert item_weights.shape == (N, 1, K)
        assert bool(jnp.all(jnp.isfinite(predicted)))
        # hard gumbel weights must be one-hot rows
        assert bool(jnp.all(jnp.sum(user_weights, axis=-1) == 1.0))
        assert bool(jnp.all(jnp.sum(item_weights, axis=-1) == 1.0))
        results[tag] = (predicted, user_weights, item_weights)

    # Exact-dtype path must match the pure-JAX reference.
    ref_p, ref_uw, ref_iw = _reference_forward(
        user_query, item_query, user_context, item_context,
        user_key_mask, item_key_mask, W, bias, g_user, g_item,
    )
    p32, uw32, iw32 = results["f32"]
    assert bool(jnp.allclose(p32, ref_p, rtol=5e-3, atol=5e-3))
    assert bool(jnp.allclose(uw32, ref_uw))
    assert bool(jnp.allclose(iw32, ref_iw))

    print("KERNEL_OK")
</pallas_src>

<mosaic_0001>
module attributes {stable_mosaic.version = 11 : i64} {
  func.func @_cross_attention_kernel(%arg0: i32, %arg1: memref<16x128xf32, #tpu.memory_space<vmem>>, %arg2: memref<16x256xbf16, #tpu.memory_space<vmem>>, %arg3: memref<16x256xbf16, #tpu.memory_space<vmem>>, %arg4: memref<128x256xf32, #tpu.memory_space<vmem>>, %arg5: memref<1x256xf32, #tpu.memory_space<vmem>>, %arg6: memref<256x8xf32, #tpu.memory_space<vmem>>, %arg7: memref<8x256xf32, #tpu.memory_space<vmem>>, %arg8: memref<256x32xf32, #tpu.memory_space<vmem>>, %arg9: memref<128x256xf32, #tpu.memory_space<vmem>>, %arg10: memref<1x256xf32, #tpu.memory_space<vmem>>, %arg11: memref<256x8xf32, #tpu.memory_space<vmem>>, %arg12: memref<8x256xf32, #tpu.memory_space<vmem>>, %arg13: memref<256x32xf32, #tpu.memory_space<vmem>>, %arg14: memref<16x128xf32, #tpu.memory_space<vmem>>) attributes {dimension_semantics = [#tpu.dimension_semantics<parallel>], iteration_bounds = array<i64: 1>, scalar_prefetch = 0 : i64, scratch_operands = 0 : i64, tpu.core_type = #tpu.core_type<tc>, window_params = [{transform_indices = @transform_0, window_bounds = array<i64: 16, 128>}, {transform_indices = @transform_1, window_bounds = array<i64: 16, 256>}, {transform_indices = @transform_2, window_bounds = array<i64: 16, 256>}, {pipeline_mode = #tpu.pipeline_mode<synchronous>, transform_indices = @transform_3, window_bounds = array<i64: 128, 256>}, {pipeline_mode = #tpu.pipeline_mode<synchronous>, transform_indices = @transform_4, window_bounds = array<i64: 1, 256>}, {pipeline_mode = #tpu.pipeline_mode<synchronous>, transform_indices = @transform_5, window_bounds = array<i64: 256, 8>}, {pipeline_mode = #tpu.pipeline_mode<synchronous>, transform_indices = @transform_6, window_bounds = array<i64: 8, 256>}, {pipeline_mode = #tpu.pipeline_mode<synchronous>, transform_indices = @transform_7, window_bounds = array<i64: 256, 32>}, {pipeline_mode = #tpu.pipeline_mode<synchronous>, transform_indices = @transform_8, window_bounds = array<i64: 128, 256>}, {pipeline_mode = #tpu.pipeline_mode<synchronous>, transform_indices = @transform_9, window_bounds = array<i64: 1, 256>}, {pipeline_mode = #tpu.pipeline_mode<synchronous>, transform_indices = @transform_10, window_bounds = array<i64: 256, 8>}, {pipeline_mode = #tpu.pipeline_mode<synchronous>, transform_indices = @transform_11, window_bounds = array<i64: 8, 256>}, {pipeline_mode = #tpu.pipeline_mode<synchronous>, transform_indices = @transform_12, window_bounds = array<i64: 256, 32>}, {transform_indices = @transform_13, window_bounds = array<i64: 16, 128>}]} {
    %c0 = arith.constant 0 : index
    %c0_0 = arith.constant 0 : index
    %0 = vector.load %arg1[%c0, %c0_0] : memref<16x128xf32, #tpu.memory_space<vmem>>, vector<16x128xf32>
    %c0_1 = arith.constant 0 : index
    %c0_2 = arith.constant 0 : index
    %1 = vector.load %arg2[%c0_1, %c0_2] : memref<16x256xbf16, #tpu.memory_space<vmem>>, vector<16x256xbf16>
    %2 = arith.extf %1 : vector<16x256xbf16> to vector<16x256xf32>
    %c0_3 = arith.constant 0 : index
    %c0_4 = arith.constant 0 : index
    %3 = vector.load %arg4[%c0_3, %c0_4] : memref<128x256xf32, #tpu.memory_space<vmem>>, vector<128x256xf32>
    %cst = arith.constant dense<0.000000e+00> : vector<16x256xf32>
    %4 = tpu.matmul %0, %3, %cst {dimension_numbers = #tpu.dot_dimension_numbers<[1], [0], [0], [1], [0, 0, 1, 1], [], []>} : vector<16x128xf32>, vector<128x256xf32>, vector<16x256xf32> -> vector<16x256xf32>
    %c0_5 = arith.constant 0 : index
    %c0_6 = arith.constant 0 : index
    %5 = vector.load %arg5[%c0_5, %c0_6] : memref<1x256xf32, #tpu.memory_space<vmem>>, vector<1x256xf32>
    %6 = vector.broadcast %5 : vector<1x256xf32> to vector<16x256xf32>
    %7 = arith.addf %4, %6 : vector<16x256xf32>
    %8 = arith.mulf %7, %2 : vector<16x256xf32>
    %c0_7 = arith.constant 0 : index
    %c0_8 = arith.constant 0 : index
    %9 = vector.load %arg6[%c0_7, %c0_8] : memref<256x8xf32, #tpu.memory_space<vmem>>, vector<256x8xf32>
    %cst_9 = arith.constant dense<0.000000e+00> : vector<16x8xf32>
    %10 = tpu.matmul %8, %9, %cst_9 {dimension_numbers = #tpu.dot_dimension_numbers<[1], [0], [0], [1], [0, 0, 1, 1], [], []>} : vector<16x256xf32>, vector<256x8xf32>, vector<16x8xf32> -> vector<16x8xf32>
    %11 = vector.extract_strided_slice %0 {offsets = [0, 64], sizes = [16, 8], strides = [1, 1]} : vector<16x128xf32> to vector<16x8xf32>
    %12 = arith.addf %10, %11 : vector<16x8xf32>
    %cst_10 = arith.constant dense<0xFF800000> : vector<16xf32>
    %13 = vector.multi_reduction <maximumf>, %12, %cst_10 [1] : vector<16x8xf32> to vector<16xf32>
    %14 = vector.shape_cast %13 : vector<16xf32> to vector<16x1xf32>
    %15 = vector.broadcast %14 : vector<16x1xf32> to vector<16x8xf32>
    %16 = arith.subf %12, %15 : vector<16x8xf32>
    %17 = math.exp %16 : vector<16x8xf32>
    %cst_11 = arith.constant dense<0.000000e+00> : vector<16xf32>
    %18 = vector.multi_reduction <add>, %17, %cst_11 [1] : vector<16x8xf32> to vector<16xf32>
    %19 = vector.shape_cast %18 : vector<16xf32> to vector<16x1xf32>
    %20 = vector.broadcast %19 : vector<16x1xf32> to vector<16x8xf32>
    %21 = arith.divf %17, %20 : vector<16x8xf32>
    %22 = vector.extract_strided_slice %0 {offsets = [0, 80], sizes = [16, 8], strides = [1, 1]} : vector<16x128xf32> to vector<16x8xf32>
    %23 = arith.addf %21, %22 : vector<16x8xf32>
    %cst_12 = arith.constant dense<0xFF800000> : vector<16xf32>
    %24 = vector.multi_reduction <maximumf>, %23, %cst_12 [1] : vector<16x8xf32> to vector<16xf32>
    %25 = vector.shape_cast %24 : vector<16xf32> to vector<16x1xf32>
    %26 = tpu.iota {dimensions = array<i32: 1>} : vector<16x8xi32>
    %27 = vector.broadcast %25 : vector<16x1xf32> to vector<16x8xf32>
    %28 = arith.cmpf oeq, %23, %27 : vector<16x8xf32>
    %c8_i32 = arith.constant 8 : i32
    %29 = vector.broadcast %c8_i32 : i32 to vector<16x8xi32>
    %30 = arith.select %28, %26, %29 : vector<16x8xi1>, vector<16x8xi32>
    %cst_13 = arith.constant dense<2147483647> : vector<16xi32>
    %31 = vector.multi_reduction <minsi>, %30, %cst_13 [1] : vector<16x8xi32> to vector<16xi32>
    %32 = vector.shape_cast %31 : vector<16xi32> to vector<16x1xi32>
    %33 = vector.broadcast %32 : vector<16x1xi32> to vector<16x8xi32>
    %34 = arith.cmpi eq, %26, %33 : vector<16x8xi32>
    %35 = arith.extui %34 : vector<16x8xi1> to vector<16x8xi32>
    %36 = arith.sitofp %35 : vector<16x8xi32> to vector<16x8xf32>
    %c0_14 = arith.constant 0 : index
    %c0_15 = arith.constant 0 : index
    %37 = vector.load %arg7[%c0_14, %c0_15] : memref<8x256xf32, #tpu.memory_space<vmem>>, vector<8x256xf32>
    %cst_16 = arith.constant dense<0.000000e+00> : vector<16x256xf32>
    %38 = tpu.matmul %36, %37, %cst_16 {dimension_numbers = #tpu.dot_dimension_numbers<[1], [0], [0], [1], [0, 0, 1, 1], [], []>} : vector<16x8xf32>, vector<8x256xf32>, vector<16x256xf32> -> vector<16x256xf32>
    %39 = arith.mulf %38, %2 : vector<16x256xf32>
    %c0_17 = arith.constant 0 : index
    %c0_18 = arith.constant 0 : index
    %40 = vector.load %arg8[%c0_17, %c0_18] : memref<256x32xf32, #tpu.memory_space<vmem>>, vector<256x32xf32>
    %cst_19 = arith.constant dense<0.000000e+00> : vector<16x32xf32>
    %41 = tpu.matmul %39, %40, %cst_19 {dimension_numbers = #tpu.dot_dimension_numbers<[1], [0], [0], [1], [0, 0, 1, 1], [], []>} : vector<16x256xf32>, vector<256x32xf32>, vector<16x32xf32> -> vector<16x32xf32>
    %c0_20 = arith.constant 0 : index
    %c0_21 = arith.constant 0 : index
    %42 = vector.load %arg3[%c0_20, %c0_21] : memref<16x256xbf16, #tpu.memory_space<vmem>>, vector<16x256xbf16>
    %43 = arith.extf %42 : vector<16x256xbf16> to vector<16x256xf32>
    %c0_22 = arith.constant 0 : index
    %c0_23 = arith.constant 0 : index
    %44 = vector.load %arg9[%c0_22, %c0_23] : memref<128x256xf32, #tpu.memory_space<vmem>>, vector<128x256xf32>
    %cst_24 = arith.constant dense<0.000000e+00> : vector<16x256xf32>
    %45 = tpu.matmul %0, %44, %cst_24 {dimension_numbers = #tpu.dot_dimension_numbers<[1], [0], [0], [1], [0, 0, 1, 1], [], []>} : vector<16x128xf32>, vector<128x256xf32>, vector<16x256xf32> -> vector<16x256xf32>
    %c0_25 = arith.constant 0 : index
    %c0_26 = arith.constant 0 : index
    %46 = vector.load %arg10[%c0_25, %c0_26] : memref<1x256xf32, #tpu.memory_space<vmem>>, vector<1x256xf32>
    %47 = vector.broadcast %46 : vector<1x256xf32> to vector<16x256xf32>
    %48 = arith.addf %45, %47 : vector<16x256xf32>
    %49 = arith.mulf %48, %43 : vector<16x256xf32>
    %c0_27 = arith.constant 0 : index
    %c0_28 = arith.constant 0 : index
    %50 = vector.load %arg11[%c0_27, %c0_28] : memref<256x8xf32, #tpu.memory_space<vmem>>, vector<256x8xf32>
    %cst_29 = arith.constant dense<0.000000e+00> : vector<16x8xf32>
    %51 = tpu.matmul %49, %50, %cst_29 {dimension_numbers = #tpu.dot_dimension_numbers<[1], [0], [0], [1], [0, 0, 1, 1], [], []>} : vector<16x256xf32>, vector<256x8xf32>, vector<16x8xf32> -> vector<16x8xf32>
    %52 = vector.extract_strided_slice %0 {offsets = [0, 72], sizes = [16, 8], strides = [1, 1]} : vector<16x128xf32> to vector<16x8xf32>
    %53 = arith.addf %51, %52 : vector<16x8xf32>
    %cst_30 = arith.constant dense<0xFF800000> : vector<16xf32>
    %54 = vector.multi_reduction <maximumf>, %53, %cst_30 [1] : vector<16x8xf32> to vector<16xf32>
    %55 = vector.shape_cast %54 : vector<16xf32> to vector<16x1xf32>
    %56 = vector.broadcast %55 : vector<16x1xf32> to vector<16x8xf32>
    %57 = arith.subf %53, %56 : vector<16x8xf32>
    %58 = math.exp %57 : vector<16x8xf32>
    %cst_31 = arith.constant dense<0.000000e+00> : vector<16xf32>
    %59 = vector.multi_reduction <add>, %58, %cst_31 [1] : vector<16x8xf32> to vector<16xf32>
    %60 = vector.shape_cast %59 : vector<16xf32> to vector<16x1xf32>
    %61 = vector.broadcast %60 : vector<16x1xf32> to vector<16x8xf32>
    %62 = arith.divf %58, %61 : vector<16x8xf32>
    %63 = vector.extract_strided_slice %0 {offsets = [0, 88], sizes = [16, 8], strides = [1, 1]} : vector<16x128xf32> to vector<16x8xf32>
    %64 = arith.addf %62, %63 : vector<16x8xf32>
    %cst_32 = arith.constant dense<0xFF800000> : vector<16xf32>
    %65 = vector.multi_reduction <maximumf>, %64, %cst_32 [1] : vector<16x8xf32> to vector<16xf32>
    %66 = vector.shape_cast %65 : vector<16xf32> to vector<16x1xf32>
    %67 = tpu.iota {dimensions = array<i32: 1>} : vector<16x8xi32>
    %68 = vector.broadcast %66 : vector<16x1xf32> to vector<16x8xf32>
    %69 = arith.cmpf oeq, %64, %68 : vector<16x8xf32>
    %c8_i32_33 = arith.constant 8 : i32
    %70 = vector.broadcast %c8_i32_33 : i32 to vector<16x8xi32>
    %71 = arith.select %69, %67, %70 : vector<16x8xi1>, vector<16x8xi32>
    %cst_34 = arith.constant dense<2147483647> : vector<16xi32>
    %72 = vector.multi_reduction <minsi>, %71, %cst_34 [1] : vector<16x8xi32> to vector<16xi32>
    %73 = vector.shape_cast %72 : vector<16xi32> to vector<16x1xi32>
    %74 = vector.broadcast %73 : vector<16x1xi32> to vector<16x8xi32>
    %75 = arith.cmpi eq, %67, %74 : vector<16x8xi32>
    %76 = arith.extui %75 : vector<16x8xi1> to vector<16x8xi32>
    %77 = arith.sitofp %76 : vector<16x8xi32> to vector<16x8xf32>
    %c0_35 = arith.constant 0 : index
    %c0_36 = arith.constant 0 : index
    %78 = vector.load %arg12[%c0_35, %c0_36] : memref<8x256xf32, #tpu.memory_space<vmem>>, vector<8x256xf32>
    %cst_37 = arith.constant dense<0.000000e+00> : vector<16x256xf32>
    %79 = tpu.matmul %77, %78, %cst_37 {dimension_numbers = #tpu.dot_dimension_numbers<[1], [0], [0], [1], [0, 0, 1, 1], [], []>} : vector<16x8xf32>, vector<8x256xf32>, vector<16x256xf32> -> vector<16x256xf32>
    %80 = arith.mulf %79, %43 : vector<16x256xf32>
    %c0_38 = arith.constant 0 : index
    %c0_39 = arith.constant 0 : index
    %81 = vector.load %arg13[%c0_38, %c0_39] : memref<256x32xf32, #tpu.memory_space<vmem>>, vector<256x32xf32>
    %cst_40 = arith.constant dense<0.000000e+00> : vector<16x32xf32>
    %82 = tpu.matmul %80, %81, %cst_40 {dimension_numbers = #tpu.dot_dimension_numbers<[1], [0], [0], [1], [0, 0, 1, 1], [], []>} : vector<16x256xf32>, vector<256x32xf32>, vector<16x32xf32> -> vector<16x32xf32>
    %83 = arith.mulf %41, %82 : vector<16x32xf32>
    %84 = arith.negf %83 : vector<16x32xf32>
    %85 = math.exp %84 : vector<16x32xf32>
    %cst_41 = arith.constant 1.000000e+00 : f32
    %86 = vector.broadcast %cst_41 : f32 to vector<16x32xf32>
    %87 = arith.addf %86, %85 : vector<16x32xf32>
    %88 = arith.divf %86, %87 : vector<16x32xf32>
    %cst_42 = arith.constant 0.000000e+00 : f32
    %89 = vector.broadcast %cst_42 : f32 to vector<16x80xf32>
    %90 = tpu.concatenate %88, %36, %77, %89 in 1 : vector<16x32xf32>, vector<16x8xf32>, vector<16x8xf32>, vector<16x80xf32> -> vector<16x128xf32>
    %c0_43 = arith.constant 0 : index
    %c0_44 = arith.constant 0 : index
    %91 = vector.load %arg14[%c0_43, %c0_44] : memref<16x128xf32, #tpu.memory_space<vmem>>, vector<16x128xf32>
    tpu.vector_store %arg14[%c0_43, %c0_44], %90 {strides = array<i32>} : memref<16x128xf32, #tpu.memory_space<vmem>>, vector<16x128xf32>,
    return
  }
  func.func @transform_0(%arg0: i32) -> (i32, i32) {
    %c0_i32 = arith.constant 0 : i32
    %c0_i32_0 = arith.constant 0 : i32
    return %arg0, %c0_i32 : i32, i32
  }
  func.func @transform_1(%arg0: i32) -> (i32, i32) {
    %c0_i32 = arith.constant 0 : i32
    %c0_i32_0 = arith.constant 0 : i32
    return %arg0, %c0_i32 : i32, i32
  }
  func.func @transform_2(%arg0: i32) -> (i32, i32) {
    %c0_i32 = arith.constant 0 : i32
    %c0_i32_0 = arith.constant 0 : i32
    return %arg0, %c0_i32 : i32, i32
  }
  func.func @transform_3(%arg0: i32) -> (i32, i32) {
    %c0_i32 = arith.constant 0 : i32
    %c0_i32_0 = arith.constant 0 : i32
    %c0_i32_1 = arith.constant 0 : i32
    return %c0_i32, %c0_i32_0 : i32, i32
  }
  func.func @transform_4(%arg0: i32) -> (i32, i32) {
    %c0_i32 = arith.constant 0 : i32
    %c0_i32_0 = arith.constant 0 : i32
    %c0_i32_1 = arith.constant 0 : i32
    return %c0_i32, %c0_i32_0 : i32, i32
  }
  func.func @transform_5(%arg0: i32) -> (i32, i32) {
    %c0_i32 = arith.constant 0 : i32
    %c0_i32_0 = arith.constant 0 : i32
    %c0_i32_1 = arith.constant 0 : i32
    return %c0_i32, %c0_i32_0 : i32, i32
  }
  func.func @transform_6(%arg0: i32) -> (i32, i32) {
    %c0_i32 = arith.constant 0 : i32
    %c0_i32_0 = arith.constant 0 : i32
    %c0_i32_1 = arith.constant 0 : i32
    return %c0_i32, %c0_i32_0 : i32, i32
  }
  func.func @transform_7(%arg0: i32) -> (i32, i32) {
    %c0_i32 = arith.constant 0 : i32
    %c0_i32_0 = arith.constant 0 : i32
    %c0_i32_1 = arith.constant 0 : i32
    return %c0_i32, %c0_i32_0 : i32, i32
  }
  func.func @transform_8(%arg0: i32) -> (i32, i32) {
    %c0_i32 = arith.constant 0 : i32
    %c0_i32_0 = arith.constant 0 : i32
    %c0_i32_1 = arith.constant 0 : i32
    return %c0_i32, %c0_i32_0 : i32, i32
  }
  func.func @transform_9(%arg0: i32) -> (i32, i32) {
    %c0_i32 = arith.constant 0 : i32
    %c0_i32_0 = arith.constant 0 : i32
    %c0_i32_1 = arith.constant 0 : i32
    return %c0_i32, %c0_i32_0 : i32, i32
  }
  func.func @transform_10(%arg0: i32) -> (i32, i32) {
    %c0_i32 = arith.constant 0 : i32
    %c0_i32_0 = arith.constant 0 : i32
    %c0_i32_1 = arith.constant 0 : i32
    return %c0_i32, %c0_i32_0 : i32, i32
  }
  func.func @transform_11(%arg0: i32) -> (i32, i32) {
    %c0_i32 = arith.constant 0 : i32
    %c0_i32_0 = arith.constant 0 : i32
    %c0_i32_1 = arith.constant 0 : i32
    return %c0_i32, %c0_i32_0 : i32, i32
  }
  func.func @transform_12(%arg0: i32) -> (i32, i32) {
    %c0_i32 = arith.constant 0 : i32
    %c0_i32_0 = arith.constant 0 : i32
    %c0_i32_1 = arith.constant 0 : i32
    return %c0_i32, %c0_i32_0 : i32, i32
  }
  func.func @transform_13(%arg0: i32) -> (i32, i32) {
    %c0_i32 = arith.constant 0 : i32
    %c0_i32_0 = arith.constant 0 : i32
    return %arg0, %c0_i32 : i32, i32
  }
}

</mosaic_0001>

<bundles_post_ra>
// kernel: cross_attention_forward.1
= control target key start
LH: loop header
LB: loop body
LE: loop exit
PB: predicated region body
PF: predicated region fallthrough
CT: control target
= control target key end

     0   :  { %s1004_s23 = smov 64   ;;  %vm226_vm0 = vcmask 64512   ;;  %s1009_s16 = smov 32   ;;  %s1840_s3 = inlined_call_operand.vmem [shape: f32[128,256], index: 3, kind: input, shape index: {}]   ;;  %s1841_s5 = inlined_call_operand.vmem [shape: f32[256,8], index: 5, kind: input, shape index: {}, may-alias: {5,10}]   ;;  %s1842_s0 = inlined_call_operand.vmem [shape: f32[16,128], index: 0, kind: input, shape index: {}]   ;;  %s1843_s4 = inlined_call_operand.vmem [shape: f32[1,256], index: 4, kind: input, shape index: {}, may-alias: {4,9}]   ;;  %s1844_s1 = inlined_call_operand.vmem [shape: bf16[16,256], index: 1, kind: input, shape index: {}]   ;;  %s1845_s6 = inlined_call_operand.vmem [shape: f32[8,256], index: 6, kind: input, shape index: {}, may-alias: {6,11}]   ;;  %s1846_s8 = inlined_call_operand.vmem [shape: f32[128,256], index: 8, kind: input, shape index: {}]   ;;  %s1847_s7 = inlined_call_operand.vmem [shape: f32[256,32], index: 7, kind: input, shape index: {}, may-alias: {7,12}]   ;;  %s1848_s10 = inlined_call_operand.vmem [shape: f32[256,8], index: 10, kind: input, shape index: {}, may-alias: {5,10}]   ;;  %s1849_s9 = inlined_call_operand.vmem [shape: f32[1,256], index: 9, kind: input, shape index: {}, may-alias: {4,9}]   ;;  %s1850_s2 = inlined_call_operand.vmem [shape: bf16[16,256], index: 2, kind: input, shape index: {}]   ;;  %s1851_s11 = inlined_call_operand.vmem [shape: f32[8,256], index: 11, kind: input, shape index: {}, may-alias: {6,11}]   ;;  %s1852_s12 = inlined_call_operand.vmem [shape: f32[256,32], index: 12, kind: input, shape index: {}, may-alias: {7,12}]   ;;  %s1853_s13 = inlined_call_operand.vmem [shape: f32[16,128], index: 13, kind: output, shape index: {}]  }
   0x1   :  { %v82_v0 = vld [vmem:[%s1840_s3 + $0xf0] sm:$0xff]  ;;  %v80_v1 = vld [vmem:[%s1840_s3 + $0xe0] sm:$0xff]  ;;  %v83_v2 = vld [vmem:[%s1840_s3 + $0xf8] sm:$0xff] }
   0x2   :  { %90 = vmatpush.msra.mxu0 %v82_v0  ;;  %113 = vmatpush.msra.mxu1 %v83_v2  ;;  %v81_v3 = vld [vmem:[%s1840_s3 + $0xe8] sm:$0xff]  ;;  %v78_v4 = vld [vmem:[%s1840_s3 + $0xd0] sm:$0xff]  ;;  %v79_v5 = vld [vmem:[%s1840_s3 + $0xd8] sm:$0xff] }
   0x3   :  { %v76_v6 = vld [vmem:[%s1840_s3 + $0xc0] sm:$0xff]  ;;  %v77_v7 = vld [vmem:[%s1840_s3 + $0xc8] sm:$0xff]  ;;  %v74_v8 = vld [vmem:[%s1840_s3 + $0xb0] sm:$0xff] }
   0x4   :  { %91 = vmatpush.msra.mxu0 %v80_v1  ;;  %114 = vmatpush.msra.mxu1 %v81_v3  ;;  %v75_v9 = vld [vmem:[%s1840_s3 + $0xb8] sm:$0xff]  ;;  %v72_v10 = vld [vmem:[%s1840_s3 + $0xa0] sm:$0xff]  ;;  %v73_v11 = vld [vmem:[%s1840_s3 + $0xa8] sm:$0xff] }
   0x5   :  { %v70_v12 = vld [vmem:[%s1840_s3 + $0x90] sm:$0xff]  ;;  %v71_v13 = vld [vmem:[%s1840_s3 + $0x98] sm:$0xff]  ;;  %v68_v16 = vld [vmem:[%s1840_s3 + $0x80] sm:$0xff] }
   0x6   :  { %92 = vmatpush.msra.mxu0 %v78_v4  ;;  %115 = vmatpush.msra.mxu1 %v79_v5  ;;  %v155_v14 = vld [vmem:[%s1841_s5 + $0x78] sm:$0xff]  ;;  %v154_v15 = vld [vmem:[%s1841_s5 + $0x70] sm:$0xff]  ;;  %v69_v17 = vld [vmem:[%s1840_s3 + $0x88] sm:$0xff] }
   0x7   :  { %180 = vmatpush.msra.mxu2 %v155_v14  ;;  %v171_v18 = vld [vmem:[%s1841_s5 + $0xf8] sm:$0xff]  ;;  %v153_v19 = vld [vmem:[%s1841_s5 + $0x68] sm:$0xff]  ;;  %v170_v20 = vld [vmem:[%s1841_s5 + $0xf0] sm:$0xff] }
   0x8   :  { %93 = vmatpush.msra.mxu0 %v76_v6  ;;  %116 = vmatpush.msra.mxu1 %v77_v7  ;;  %v66_v21 = vld [vmem:[%s1840_s3 + $0x70] sm:$0xff]  ;;  %v67_v22 = vld [vmem:[%s1840_s3 + $0x78] sm:$0xff]  ;;  %v152_v23 = vld [vmem:[%s1841_s5 + $0x60] sm:$0xff] }
   0x9   :  { %181 = vmatpush.msra.mxu2 %v154_v15  ;;  %203 = vmatpush.msra.mxu3 %v171_v18  ;;  %v169_v24 = vld [vmem:[%s1841_s5 + $0xe8] sm:$0xff]  ;;  %v64_v25 = vld [vmem:[%s1840_s3 + $0x60] sm:$0xff]  ;;  %v151_v27 = vld [vmem:[%s1841_s5 + $0x58] sm:$0xff] }
   0xa   :  { %94 = vmatpush.msra.mxu0 %v74_v8  ;;  %117 = vmatpush.msra.mxu1 %v75_v9  ;;  %v65_v26 = vld [vmem:[%s1840_s3 + $0x68] sm:$0xff]  ;;  %v168_v28 = vld [vmem:[%s1841_s5 + $0xe0] sm:$0xff]  ;;  %v62_v29 = vld [vmem:[%s1840_s3 + $0x50] sm:$0xff] }
   0xb   :  { %182 = vmatpush.msra.mxu2 %v153_v19  ;;  %204 = vmatpush.msra.mxu3 %v170_v20  ;;  %v63_v30 = vld [vmem:[%s1840_s3 + $0x58] sm:$0xff]  ;;  %v150_v31 = vld [vmem:[%s1841_s5 + $0x50] sm:$0xff]  ;;  %v60_v33 = vld [vmem:[%s1840_s3 + $0x40] sm:$0xff] }
   0xc   :  { %95 = vmatpush.msra.mxu0 %v72_v10  ;;  %118 = vmatpush.msra.mxu1 %v73_v11  ;;  %v167_v32 = vld [vmem:[%s1841_s5 + $0xd8] sm:$0xff]  ;;  %v61_v34 = vld [vmem:[%s1840_s3 + $0x48] sm:$0xff]  ;;  %v166_v36 = vld [vmem:[%s1841_s5 + $0xd0] sm:$0xff] }
   0xd   :  { %183 = vmatpush.msra.mxu2 %v152_v23  ;;  %205 = vmatpush.msra.mxu3 %v169_v24  ;;  %v149_v35 = vld [vmem:[%s1841_s5 + $0x48] sm:$0xff]  ;;  %v58_v37 = vld [vmem:[%s1840_s3 + $0x30] sm:$0xff]  ;;  %v59_v38 = vld [vmem:[%s1840_s3 + $0x38] sm:$0xff] }
   0xe   :  { %96 = vmatpush.msra.mxu0 %v70_v12  ;;  %119 = vmatpush.msra.mxu1 %v71_v13  ;;  %v148_v39 = vld [vmem:[%s1841_s5 + $0x40] sm:$0xff]  ;;  %v165_v40 = vld [vmem:[%s1841_s5 + $0xc8] sm:$0xff]  ;;  %v147_v43 = vld [vmem:[%s1841_s5 + $0x38] sm:$0xff] }
   0xf   :  { %184 = vmatpush.msra.mxu2 %v151_v27  ;;  %206 = vmatpush.msra.mxu3 %v168_v28  ;;  %v56_v41 = vld [vmem:[%s1840_s3 + $0x20] sm:$0xff]  ;;  %v57_v42 = vld [vmem:[%s1840_s3 + $0x28] sm:$0xff]  ;;  %v54_v45 = vld [vmem:[%s1840_s3 + $0x10] sm:$0xff] }
  0x10   :  { %97 = vmatpush.msra.mxu0 %v68_v16  ;;  %120 = vmatpush.msra.mxu1 %v69_v17  ;;  %v164_v44 = vld [vmem:[%s1841_s5 + $0xc0] sm:$0xff]  ;;  %v55_v46 = vld [vmem:[%s1840_s3 + $0x18] sm:$0xff]  ;;  %v146_v47 = vld [vmem:[%s1841_s5 + $0x30] sm:$0xff] }
  0x11   :  { %185 = vmatpush.msra.mxu2 %v150_v31  ;;  %207 = vmatpush.msra.mxu3 %v167_v32  ;;  %v163_v48 = vld [vmem:[%s1841_s5 + $0xb8] sm:$0xff]  ;;  %v52_v49 = vld [vmem:[%s1840_s3] sm:$0xff]  ;;  %v53_v50 = vld [vmem:[%s1840_s3 + $0x8] sm:$0xff] }
  0x12   :  { %98 = vmatpush.msra.mxu0 %v66_v21  ;;  %121 = vmatpush.msra.mxu1 %v67_v22  ;;  %v1236_v51 = vld [vmem:[%s1842_s0] sm:$0xff]  ;;  %v145_v52 = vld [vmem:[%s1841_s5 + $0x28] sm:$0xff]  ;;  %v162_v53 = vld [vmem:[%s1841_s5 + $0xb0] sm:$0xff] }
  0x13   :  { %186 = vmatpush.msra.mxu2 %v149_v35  ;;  %208 = vmatpush.msra.mxu3 %v166_v36  ;;  %v144_v54 = vld [vmem:[%s1841_s5 + $0x20] sm:$0xff]  ;;  %v161_v55 = vld [vmem:[%s1841_s5 + $0xa8] sm:$0xff]  ;;  %v143_v56 = vld [vmem:[%s1841_s5 + $0x18] sm:$0xff] }
  0x14   :  { %99 = vmatpush.msra.mxu0 %v64_v25  ;;  %122 = vmatpush.msra.mxu1 %v65_v26  ;;  %v160_v57 = vld [vmem:[%s1841_s5 + $0xa0] sm:$0xff]  ;;  %v1261_v58 = vld [vmem:[%s1842_s0 + $0x8] sm:$0xff]  ;;  %v142_v59 = vld [vmem:[%s1841_s5 + $0x10] sm:$0xff] }
  0x15   :  { %187 = vmatpush.msra.mxu2 %v148_v39  ;;  %209 = vmatpush.msra.mxu3 %v165_v40  ;;  %v159_v60 = vld [vmem:[%s1841_s5 + $0x98] sm:$0xff]  ;;  %v141_v61 = vld [vmem:[%s1841_s5 + $0x8] sm:$0xff]  ;;  %v158_v62 = vld [vmem:[%s1841_s5 + $0x90] sm:$0xff] }
  0x16   :  { %100 = vmatpush.msra.mxu0 %v62_v29  ;;  %123 = vmatpush.msra.mxu1 %v63_v30  ;;  %v140_v63 = vld [vmem:[%s1841_s5] sm:$0xff]  ;;  %v157_v0 = vld [vmem:[%s1841_s5 + $0x88] sm:$0xff] }
  0x17   :  { %188 = vmatpush.msra.mxu2 %v147_v43  ;;  %210 = vmatpush.msra.mxu3 %v164_v44  ;;  %v156_v1 = vld [vmem:[%s1841_s5 + $0x80] sm:$0xff]  ;;  %v1305_v14 = vld [vmem:[%s1844_s1 + $0x8] sm:$0xff] }
  0x18   :  { %101 = vmatpush.msra.mxu0 %v60_v33  ;;  %124 = vmatpush.msra.mxu1 %v61_v34  ;;  %v84_v2 = vld [vmem:[%s1843_s4] sm:$0x3]  ;;  %v50_v15 = vunpack.c.l.bf16 %v1305_v14  ;;  %v51_v16 = vunpack.c.h.bf16 %v1305_v14  ;;  %v1678_v14 = vld [vmem:[%s1850_s2 + $0x8] sm:$0xff] }
  0x19   :  { %189 = vmatpush.msra.mxu2 %v146_v47  ;;  %211 = vmatpush.msra.mxu3 %v163_v48  ;;  %v1294_v3 = vld [vmem:[%s1844_s1] sm:$0xff]  ;;  %v86_v4 = vperm.slane %v84_v2, 0  ;;  %v87_v5 = vperm.slane %v84_v2, 1  ;;  %s1005_s1 = smov 48  }
  0x1a   :  { %102 = vmatpush.msra.mxu0 %v58_v37  ;;  %125 = vmatpush.msra.mxu1 %v59_v38  ;;  %v48_v6 = vunpack.c.l.bf16 %v1294_v3  ;;  %v49_v7 = vunpack.c.h.bf16 %v1294_v3 }
  0x1b   :  { %190 = vmatpush.msra.mxu2 %v145_v52  ;;  %212 = vmatpush.msra.mxu3 %v162_v53 }
  0x1c   :  { %103 = vmatpush.msra.mxu0 %v56_v41  ;;  %126 = vmatpush.msra.mxu1 %v57_v42 }
  0x1d   :  { %191 = vmatpush.msra.mxu2 %v144_v54  ;;  %213 = vmatpush.msra.mxu3 %v161_v55 }
  0x1e   :  { %104 = vmatpush.msra.mxu0 %v54_v45  ;;  %127 = vmatpush.msra.mxu1 %v55_v46 }
  0x1f   :  { %192 = vmatpush.msra.mxu2 %v143_v56  ;;  %214 = vmatpush.msra.mxu3 %v160_v57 }
  0x20   :  { %105 = vmatpush.msra.mxu0 %v52_v49  ;;  %128 = vmatpush.msra.mxu1 %v53_v50 }
  0x21   :  { %106 = vmatmul.f32.vlgmr.msra.gmra.mxu0 %v1236_v51  ;;  %129 = vmatmul.f32.vlgmr.msra.gmra.mxu1 %v1236_v51 }
  0x22   :  { %174 = vrot.lane.b32.xlu0 %v1236_v51, %s1004_s23  ;;  %193 = vmatpush.msra.mxu2 %v142_v59 }
  0x23   :  { %215 = vmatpush.msra.mxu3 %v159_v60 }
  0x24   :  { %194 = vmatpush.msra.mxu2 %v141_v61 }
  0x25   :  { %216 = vmatpush.msra.mxu3 %v158_v62 }
  0x26   :  { %195 = vmatpush.msra.mxu2 %v140_v63 }
  0x27   :  { %217 = vmatpush.msra.mxu3 %v157_v0 }
  0x29   :  { %109 = vmatmul.f32.gmra.mxu0 %v1261_v58  ;;  %132 = vmatmul.f32.gmra.mxu1 %v1261_v58 }
  0x2a   :  { %176 = vrot.lane.b32.xlu0 %v1261_v58, %s1004_s23  ;;  %218 = vmatpush.msra.mxu3 %v156_v1 }
  0x32   :  { %275 = vrot.lane.b32.xlu0 %v1236_v51, %s1005_s1 }
  0x94   :  { %v175_v23 = vpop.permute.xlu0 %174 }
  0x9c   :  { %v177_v29 = vpop.permute.xlu0 %176 }
  0x9e   :  { %v107_v8 = vpop.f32.mrf.mxu0  ;;  %v130_v9 = vpop.f32.mrf.mxu1 }
  0x9f   :  { %v108_v10 = vadd.f32 %v107_v8, %v86_v4  ;;  %v131_v11 = vadd.f32 %v130_v9, %v87_v5 }
  0xa1   :  { %v136_v12 = vmul.f32 %v108_v10, %v48_v6  ;;  %v137_v13 = vmul.f32 %v131_v11, %v49_v7 }
  0xa3   :  { %196 = vmatmul.f32.vlgmr.msra.gmra.mxu2 %v136_v12  ;;  %219 = vmatmul.f32.vlgmr.msra.gmra.mxu3 %v137_v13 }
  0xa4   :  { %v276_v60 = vpop.permute.xlu0 %275 }
  0xa6   :  { %v110_v17 = vpop.f32.mrf.mxu0  ;;  %v133_v18 = vpop.f32.mrf.mxu1 }
  0xa7   :  { %v111_v19 = vadd.f32 %v110_v17, %v86_v4  ;;  %v134_v20 = vadd.f32 %v133_v18, %v87_v5 }
  0xa9   :  { %v138_v21 = vmul.f32 %v111_v19, %v50_v15  ;;  %v139_v22 = vmul.f32 %v134_v20, %v51_v16  ;;  %v289_v19 = vlaneseq }
  0xab   :  { %199 = vmatmul.f32.gmra.mxu2 %v138_v21  ;;  %222 = vmatmul.f32.gmra.mxu3 %v139_v22  ;;  %v1321_v20 = vand.u32 127, %v289_v19  ;;  %v418_v19 = vld [vmem:[%s1847_s7 + $0xe8] sm:$0xff] }
 0x126   :  { %v197_v24 = vpop.f32.mrf.mxu2  ;;  %v220_v25 = vpop.f32.mrf.mxu3 }
 0x127   :  { %v198_v26 = vadd.f32 %v197_v24, %v175_v23 }
 0x129   :  { %v221_v27 = vadd.f32 %v220_v25, %v198_v26 }
 0x12b   :  { %v227_v28 = vsel %vm226_vm0, %v221_v27, -inf }
 0x12c   :  { %228 = vmax.xlane.f32.xlu1 %v227_v28 }
 0x12e   :  { %v200_v30 = vpop.f32.mrf.mxu2  ;;  %v223_v31 = vpop.f32.mrf.mxu3 }
 0x12f   :  { %v201_v32 = vadd.f32 %v200_v30, %v177_v29 }
 0x131   :  { %v224_v33 = vadd.f32 %v223_v31, %v201_v32  ;;  %v331_v31 = vld [vmem:[%s1845_s6] sm:$0xff]  ;;  %v332_v32 = vld [vmem:[%s1845_s6 + $0x8] sm:$0xff]  ;;  %s1007_s6 = smov 56  }
 0x132   :  { %354 = vmatpush.msrb.mxu2 %v331_v31  ;;  %377 = vmatpush.msrb.mxu3 %v332_v32  ;;  %v398_v31 = vld [vmem:[%s1847_s7 + $0x48] sm:$0xff] }
 0x133   :  { %v230_v34 = vsel %vm226_vm0, %v224_v33, -inf  ;;  %v414_v32 = vld [vmem:[%s1847_s7 + $0xc8] sm:$0xff] }
 0x134   :  { %231 = vmax.xlane.f32.xlu1 %v230_v34  ;;  %v501_v34 = vld [vmem:[%s1846_s8 + $0xe0] sm:$0xff] }
 0x14d   :  { %277 = vrot.lane.b32.xlu1 %v1261_v58, %s1005_s1 }
 0x19f   :  { %v229_v35 = vpop.xlane.xlu1 %228 }
 0x1a0   :  { %v233_v36 = vsub.f32 %v221_v27, %v229_v35  ;;  %v504_v35 = vld [vmem:[%s1846_s8 + $0xf8] sm:$0xff] }
 0x1a1   :  { %534 = vmatpush.msrb.mxu1 %v504_v35 }
 0x1a2   :  { %v235_v37 = vmul.f32 1.442695, %v233_v36  ;;  %v502_v36 = vld [vmem:[%s1846_s8 + $0xe8] sm:$0xff] }
 0x1a3   :  { %535 = vmatpush.msrb.mxu1 %v502_v36 }
 0x1a4   :  { %980 = vpow2.f32 %v235_v37  ;;  %v499_v37 = vld [vmem:[%s1846_s8 + $0xd0] sm:$0xff] }
 0x1a7   :  { %v232_v38 = vpop.xlane.xlu1 %231 }
 0x1a8   :  { %v234_v39 = vsub.f32 %v224_v33, %v232_v38  ;;  %v503_v33 = vld [vmem:[%s1846_s8 + $0xf0] sm:$0xff] }
 0x1a9   :  { %511 = vmatpush.msrb.mxu0 %v503_v33 }
 0x1aa   :  { %v981_v40 = vpop.eup %980  ;;  %v237_v41 = vmul.f32 1.442695, %v234_v39 }
 0x1ab   :  { %v239_v42 = vsel %vm226_vm0, %v981_v40, 0.0  ;;  %512 = vmatpush.msrb.mxu0 %v501_v34  ;;  %v397_v34 = vld [vmem:[%s1847_s7 + $0x40] sm:$0xff] }
 0x1ac   :  { %982 = vpow2.f32 %v237_v41  ;;  %240 = vadd.xlane.f32.xlu2 %v239_v42 }
 0x1ad   :  { %513 = vmatpush.msrb.mxu0 %v499_v37  ;;  %v413_v37 = vld [vmem:[%s1847_s7 + $0xc0] sm:$0xff] }
 0x1b2   :  { %v983_v43 = vpop.eup %982 }
 0x1b3   :  { %v242_v44 = vsel %vm226_vm0, %v983_v43, 0.0 }
 0x1b4   :  { %243 = vadd.xlane.f32.xlu2 %v242_v44 }
 0x1bf   :  { %v278_v12 = vpop.permute.xlu1 %277 }
 0x21f   :  { %v241_v45 = vpop.xlane.xlu2 %240 }
 0x220   :  { %984 = vrcp.f32 %v241_v45  ;;  %v256_v50 = vand.u32 2147483648, %v241_v45  ;;  %v254_v53 = vand.u32 2147483647, %v241_v45  ;;  %vm250_vm2 = vweird.f32 %v241_v45 }
 0x222   :  { %v257_v56 = vor.u32 1.1754944e-38, %v256_v50  ;;  %vm255_vm4 = vcmp.eq.f32.partialorder %v254_v53, 8.507059e+37  ;;  %v493_v50 = vld [vmem:[%s1846_s8 + $0xa0] sm:$0xff]  ;;  %v491_v53 = vld [vmem:[%s1846_s8 + $0x90] sm:$0xff] }
 0x226   :  { %v985_v46 = vpop.eup %984 }
 0x227   :  { %v246_v47 = vmul.f32 %v985_v46, %v241_v45  ;;  %v244_v48 = vpop.xlane.xlu2 %243  ;;  %vm251_vm1 = vweird.f32 %v985_v46 }
 0x228   :  { %986 = vrcp.f32 %v244_v48  ;;  %vm252_vm3 = vmor %vm250_vm2, %vm251_vm1  ;;  %v271_v0 = vand.u32 2147483648, %v244_v48  ;;  %v269_v4 = vand.u32 2147483647, %v244_v48  ;;  %vm265_vm6 = vweird.f32 %v244_v48 }
 0x229   :  { %v247_v49 = vsub.f32 1.0, %v246_v47  ;;  %v500_v47 = vld [vmem:[%s1846_s8 + $0xd8] sm:$0xff] }
 0x22a   :  { %v272_v9 = vor.u32 1.1754944e-38, %v271_v0  ;;  %vm270_vm8 = vcmp.eq.f32.partialorder %v269_v4, 8.507059e+37  ;;  %536 = vmatpush.msrb.mxu1 %v500_v47  ;;  %v481_v0 = vld [vmem:[%s1846_s8 + $0x40] sm:$0xff]  ;;  %v482_v4 = vld [vmem:[%s1846_s8 + $0x48] sm:$0xff] }
 0x22b   :  { %v248_v52 = vmul.f32 %v985_v46, %v247_v49  ;;  %v498_v49 = vld [vmem:[%s1846_s8 + $0xc8] sm:$0xff] }
 0x22c   :  { %537 = vmatpush.msrb.mxu1 %v498_v49  ;;  %v410_v47 = vld [vmem:[%s1847_s7 + $0xa8] sm:$0xff] }
 0x22d   :  { %v249_v54 = vadd.f32 %v985_v46, %v248_v52  ;;  %v496_v52 = vld [vmem:[%s1846_s8 + $0xb8] sm:$0xff] }
 0x22e   :  { %v987_v55 = vpop.eup %986  ;;  %538 = vmatpush.msrb.mxu1 %v496_v52  ;;  %v393_v52 = vld [vmem:[%s1847_s7 + $0x20] sm:$0xff] }
 0x22f   :  { %v261_v57 = vmul.f32 %v987_v55, %v244_v48  ;;  %v253_v59 = vsel %vm252_vm3, %v985_v46, %v249_v54  ;;  %vm266_vm5 = vweird.f32 %v987_v55  ;;  %v497_v46 = vld [vmem:[%s1846_s8 + $0xc0] sm:$0xff]  ;;  %v495_v48 = vld [vmem:[%s1846_s8 + $0xb0] sm:$0xff]  ;;  %v494_v54 = vld [vmem:[%s1846_s8 + $0xa8] sm:$0xff] }
 0x230   :  { %v258_v61 = vsel %vm255_vm4, %v257_v56, %v253_v59  ;;  %vm267_vm7 = vmor %vm265_vm6, %vm266_vm5  ;;  %514 = vmatpush.msrb.mxu0 %v497_v46  ;;  %539 = vmatpush.msrb.mxu1 %v494_v54  ;;  %v492_v56 = vld [vmem:[%s1846_s8 + $0x98] sm:$0xff]  ;;  %v490_v59 = vld [vmem:[%s1846_s8 + $0x88] sm:$0xff] }
 0x231   :  { %v262_v62 = vsub.f32 1.0, %v261_v57  ;;  %v259_v63 = vmul.f32 %v981_v40, %v258_v61  ;;  %v487_v57 = vld [vmem:[%s1846_s8 + $0x70] sm:$0xff]  ;;  %v488_v61 = vld [vmem:[%s1846_s8 + $0x78] sm:$0xff] }
 0x232   :  { %515 = vmatpush.msrb.mxu0 %v495_v48  ;;  %540 = vmatpush.msrb.mxu1 %v492_v56  ;;  %v408_v56 = vld [vmem:[%s1847_s7 + $0x98] sm:$0xff] }
 0x233   :  { %v263_v1 = vmul.f32 %v987_v55, %v262_v62  ;;  %v281_v2 = vadd.f32 %v276_v60, %v259_v63  ;;  %v485_v60 = vld [vmem:[%s1846_s8 + $0x60] sm:$0xff]  ;;  %v483_v62 = vld [vmem:[%s1846_s8 + $0x50] sm:$0xff]  ;;  %v486_v63 = vld [vmem:[%s1846_s8 + $0x68] sm:$0xff] }
 0x234   :  { %516 = vmatpush.msrb.mxu0 %v493_v50  ;;  %541 = vmatpush.msrb.mxu1 %v490_v59  ;;  %v407_v59 = vld [vmem:[%s1847_s7 + $0x90] sm:$0xff] }
 0x235   :  { %v283_v5 = vsel %vm226_vm0, %v281_v2, -inf  ;;  %v264_v8 = vadd.f32 %v987_v55, %v263_v1  ;;  %v484_v1 = vld [vmem:[%s1846_s8 + $0x58] sm:$0xff] }
 0x236   :  { %284 = vmax.xlane.f32.xlu2 %v283_v5  ;;  %517 = vmatpush.msrb.mxu0 %v491_v53  ;;  %v477_v5 = vld [vmem:[%s1846_s8 + $0x20] sm:$0xff] }
 0x237   :  { %v268_v10 = vsel %vm267_vm7, %v987_v55, %v264_v8  ;;  %v489_v55 = vld [vmem:[%s1846_s8 + $0x80] sm:$0xff]  ;;  %542 = vmatpush.msrb.mxu1 %v488_v61  ;;  %v480_v8 = vld [vmem:[%s1846_s8 + $0x38] sm:$0xff]  ;;  %v390_v61 = vld [vmem:[%s1847_s7 + $0x8] sm:$0xff] }
 0x238   :  { %v273_v11 = vsel %vm270_vm8, %v272_v9, %v268_v10  ;;  %518 = vmatpush.msrb.mxu0 %v489_v55  ;;  %v404_v9 = vld [vmem:[%s1847_s7 + $0x78] sm:$0xff]  ;;  %v403_v10 = vld [vmem:[%s1847_s7 + $0x70] sm:$0xff]  ;;  %v409_v53 = vld [vmem:[%s1847_s7 + $0xa0] sm:$0xff] }
 0x239   :  { %v274_v13 = vmul.f32 %v983_v43, %v273_v11  ;;  %543 = vmatpush.msrb.mxu1 %v486_v63  ;;  %v420_v11 = vld [vmem:[%s1847_s7 + $0xf8] sm:$0xff]  ;;  %421 = vmatpush.msra.mxu2 %v404_v9  ;;  %v574_v9 = vld [vmem:[%s1848_s10 + $0x68] sm:$0xff] }
 0x23a   :  { %519 = vmatpush.msrb.mxu0 %v487_v57  ;;  %444 = vmatpush.msra.mxu3 %v420_v11  ;;  %v392_v55 = vld [vmem:[%s1847_s7 + $0x18] sm:$0xff]  ;;  %v391_v57 = vld [vmem:[%s1847_s7 + $0x10] sm:$0xff]  ;;  %v573_v11 = vld [vmem:[%s1848_s10 + $0x60] sm:$0xff] }
 0x23b   :  { %v282_v17 = vadd.f32 %v278_v12, %v274_v13  ;;  %544 = vmatpush.msrb.mxu1 %v484_v1  ;;  %v419_v12 = vld [vmem:[%s1847_s7 + $0xf0] sm:$0xff]  ;;  %422 = vmatpush.msra.mxu2 %v403_v10  ;;  %v405_v1 = vld [vmem:[%s1847_s7 + $0x80] sm:$0xff]  ;;  %v590_v10 = vld [vmem:[%s1848_s10 + $0xe8] sm:$0xff] }
 0x23c   :  { %520 = vmatpush.msrb.mxu0 %v485_v60  ;;  %v475_v13 = vld [vmem:[%s1846_s8 + $0x10] sm:$0xff]  ;;  %445 = vmatpush.msra.mxu3 %v419_v12  ;;  %v589_v12 = vld [vmem:[%s1848_s10 + $0xe0] sm:$0xff] }
 0x23d   :  { %v286_v18 = vsel %vm226_vm0, %v282_v17, -inf  ;;  %545 = vmatpush.msrb.mxu1 %v482_v4  ;;  %v592_v4 = vld [vmem:[%s1848_s10 + $0xf8] sm:$0xff] }
 0x23e   :  { %287 = vmax.xlane.f32.xlu0 %v286_v18  ;;  %521 = vmatpush.msrb.mxu0 %v483_v62  ;;  %v402_v18 = vld [vmem:[%s1847_s7 + $0x68] sm:$0xff] }
 0x23f   :  { %546 = vmatpush.msrb.mxu1 %v480_v8  ;;  %423 = vmatpush.msra.mxu2 %v402_v18  ;;  %v406_v62 = vld [vmem:[%s1847_s7 + $0x88] sm:$0xff]  ;;  %v591_v8 = vld [vmem:[%s1848_s10 + $0xf0] sm:$0xff] }
 0x240   :  { %522 = vmatpush.msrb.mxu0 %v481_v0  ;;  %446 = vmatpush.msra.mxu3 %v418_v19  ;;  %v389_v0 = vld [vmem:[%s1847_s7] sm:$0xff]  ;;  %v571_v18 = vld [vmem:[%s1848_s10 + $0x50] sm:$0xff]  ;;  %v570_v19 = vld [vmem:[%s1848_s10 + $0x48] sm:$0xff] }
 0x252   :  { %595 = vrot.lane.b32.xlu0 %v1261_v58, %s1007_s6 }
 0x2a9   :  { %v285_v21 = vpop.xlane.xlu2 %284 }
 0x2aa   :  { %vm291_vm9 = vcmp.eq.f32.partialorder %v281_v2, %v285_v21  ;;  %v479_v2 = vld [vmem:[%s1846_s8 + $0x30] sm:$0xff]  ;;  %v473_v21 = vld [vmem:[%s1846_s8] sm:$0xff] }
 0x2ab   :  { %v293_v22 = vsel %vm291_vm9, %v1321_v20, 8  ;;  %523 = vmatpush.msrb.mxu0 %v479_v2  ;;  %v576_v2 = vld [vmem:[%s1848_s10 + $0x78] sm:$0xff] }
 0x2ac   :  { %v295_v23 = vsel %vm226_vm0, %v293_v22, 2147483647  ;;  %v476_v22 = vld [vmem:[%s1846_s8 + $0x18] sm:$0xff] }
 0x2ad   :  { %v297_v24 = vshra.s32 %v295_v23, 16  ;;  %v296_v38 = vand.u32 65535, %v295_v23  ;;  %524 = vmatpush.msrb.mxu0 %v477_v5  ;;  %v401_v23 = vld [vmem:[%s1847_s7 + $0x60] sm:$0xff]  ;;  %v575_v5 = vld [vmem:[%s1848_s10 + $0x70] sm:$0xff] }
 0x2ae   :  { %424 = vmatpush.msra.mxu2 %v401_v23  ;;  %v586_v23 = vld [vmem:[%s1848_s10 + $0xc8] sm:$0xff] }
 0x2af   :  { %v299_v25 = vcvt.s32.f32 %v297_v24  ;;  %v298_v40 = vcvt.s32.f32 %v296_v38  ;;  %525 = vmatpush.msrb.mxu0 %v475_v13  ;;  %v474_v24 = vld [vmem:[%s1846_s8 + $0x8] sm:$0xff]  ;;  %v396_v38 = vld [vmem:[%s1847_s7 + $0x38] sm:$0xff] }
 0x2b0   :  { %v572_v13 = vld [vmem:[%s1848_s10 + $0x58] sm:$0xff] }
 0x2b1   :  { %300 = vmin.xlane.f32.xlu2 %v299_v25  ;;  %v288_v26 = vpop.xlane.xlu0 %287  ;;  %526 = vmatpush.msrb.mxu0 %v473_v21  ;;  %v587_v21 = vld [vmem:[%s1848_s10 + $0xd0] sm:$0xff] }
 0x2b2   :  { %vm292_vm10 = vcmp.eq.f32.partialorder %v282_v17, %v288_v26  ;;  %v478_v17 = vld [vmem:[%s1846_s8 + $0x28] sm:$0xff]  ;;  %v400_v26 = vld [vmem:[%s1847_s7 + $0x58] sm:$0xff]  ;;  %527 = vmatmul.f32.vlgmr.msrb.gmra.mxu0 %v1236_v51 }
 0x2b3   :  { %v294_v27 = vsel %vm292_vm10, %v1321_v20, 8  ;;  %547 = vmatpush.msrb.mxu1 %v478_v17  ;;  %425 = vmatpush.msra.mxu2 %v400_v26  ;;  %v588_v17 = vld [vmem:[%s1848_s10 + $0xd8] sm:$0xff]  ;;  %v567_v26 = vld [vmem:[%s1848_s10 + $0x30] sm:$0xff] }
 0x2b4   :  { %v310_v28 = vsel %vm226_vm0, %v294_v27, 2147483647  ;;  %v416_v27 = vld [vmem:[%s1847_s7 + $0xd8] sm:$0xff] }
 0x2b5   :  { %v312_v29 = vshra.s32 %v310_v28, 16  ;;  %v311_v42 = vand.u32 65535, %v310_v28  ;;  %548 = vmatpush.msrb.mxu1 %v476_v22  ;;  %v399_v28 = vld [vmem:[%s1847_s7 + $0x50] sm:$0xff]  ;;  %v569_v22 = vld [vmem:[%s1848_s10 + $0x40] sm:$0xff] }
 0x2b6   :  { %426 = vmatpush.msra.mxu2 %v399_v28  ;;  %v566_v28 = vld [vmem:[%s1848_s10 + $0x28] sm:$0xff] }
 0x2b7   :  { %v314_v30 = vcvt.s32.f32 %v312_v29  ;;  %v313_v44 = vcvt.s32.f32 %v311_v42  ;;  %549 = vmatpush.msrb.mxu1 %v474_v24  ;;  %v395_v42 = vld [vmem:[%s1847_s7 + $0x30] sm:$0xff]  ;;  %v568_v24 = vld [vmem:[%s1848_s10 + $0x38] sm:$0xff] }
 0x2b8   :  { %550 = vmatmul.f32.vlgmr.msrb.gmra.mxu1 %v1236_v51  ;;  %427 = vmatpush.msra.mxu2 %v398_v31  ;;  %v582_v31 = vld [vmem:[%s1848_s10 + $0xa8] sm:$0xff] }
 0x2b9   :  { %315 = vmin.xlane.f32.xlu2 %v314_v30 }
 0x2ba   :  { %530 = vmatmul.f32.gmra.mxu0 %v1261_v58  ;;  %428 = vmatpush.msra.mxu2 %v397_v34  ;;  %v563_v34 = vld [vmem:[%s1848_s10 + $0x10] sm:$0xff] }
 0x2bc   :  { %429 = vmatpush.msra.mxu2 %v396_v38  ;;  %v561_v38 = vld [vmem:[%s1848_s10] sm:$0xff] }
 0x2be   :  { %430 = vmatpush.msra.mxu2 %v395_v42 }
 0x2c0   :  { %553 = vmatmul.f32.gmra.mxu1 %v1261_v58 }
 0x324   :  { %v1348_v39 = vpop.xlane.xlu2 %300 }
 0x325   :  { %vm302_vm11 = vcmp.eq.f32.partialorder %v299_v25, %v1348_v39  ;;  %v417_v25 = vld [vmem:[%s1847_s7 + $0xe0] sm:$0xff]  ;;  %v307_v29 = vcvt.f32.s32 %v1348_v39 }
 0x326   :  { %v303_v41 = vsel %vm302_vm11, %v298_v40, inf  ;;  %447 = vmatpush.msra.mxu3 %v417_v25  ;;  %v412_v40 = vld [vmem:[%s1847_s7 + $0xb8] sm:$0xff]  ;;  %v585_v25 = vld [vmem:[%s1848_s10 + $0xc0] sm:$0xff] }
 0x327   :  { %304 = vmin.xlane.f32.xlu2 %v303_v41  ;;  %v308_v35 = vshll.u32 %v307_v29, 16  ;;  %v583_v29 = vld [vmem:[%s1848_s10 + $0xb0] sm:$0xff] }
 0x328   :  { %448 = vmatpush.msra.mxu3 %v416_v27  ;;  %v584_v27 = vld [vmem:[%s1848_s10 + $0xb8] sm:$0xff] }
 0x32c   :  { %v1351_v43 = vpop.xlane.xlu2 %315 }
 0x32d   :  { %vm317_vm12 = vcmp.eq.f32.partialorder %v314_v30, %v1351_v43  ;;  %v415_v30 = vld [vmem:[%s1847_s7 + $0xd0] sm:$0xff]  ;;  %v322_v41 = vcvt.f32.s32 %v1351_v43  ;;  %v394_v43 = vld [vmem:[%s1847_s7 + $0x28] sm:$0xff] }
 0x32e   :  { %v318_v45 = vsel %vm317_vm12, %v313_v44, inf  ;;  %449 = vmatpush.msra.mxu3 %v415_v30  ;;  %v411_v44 = vld [vmem:[%s1847_s7 + $0xb0] sm:$0xff]  ;;  %431 = vmatpush.msra.mxu2 %v394_v43  ;;  %v565_v30 = vld [vmem:[%s1848_s10 + $0x20] sm:$0xff] }
 0x32f   :  { %319 = vmin.xlane.f32.xlu1 %v318_v45  ;;  %v1006_v45 = vmov 0.0   ;;  %v323_v49 = vshll.u32 %v322_v41, 16 }
 0x330   :  { %450 = vmatpush.msra.mxu3 %v414_v32  ;;  %432 = vmatpush.msra.mxu2 %v393_v52  ;;  %v564_v32 = vld [vmem:[%s1848_s10 + $0x18] sm:$0xff] }
 0x332   :  { %451 = vmatpush.msra.mxu3 %v413_v37  ;;  %433 = vmatpush.msra.mxu2 %v392_v55  ;;  %v579_v37 = vld [vmem:[%s1848_s10 + $0x90] sm:$0xff]  ;;  %v1663_v55 = vld [vmem:[%s1850_s2] sm:$0xff]  ;;  %s1008_s2 = smov 40  }
 0x334   :  { %452 = vmatpush.msra.mxu3 %v412_v40  ;;  %434 = vmatpush.msra.mxu2 %v391_v57  ;;  %v577_v40 = vld [vmem:[%s1848_s10 + $0x80] sm:$0xff]  ;;  %v470_v57 = vunpack.c.h.bf16 %v1663_v55 }
 0x336   :  { %453 = vmatpush.msra.mxu3 %v411_v44  ;;  %435 = vmatpush.msra.mxu2 %v390_v61 }
 0x338   :  { %454 = vmatpush.msra.mxu3 %v410_v47  ;;  %436 = vmatpush.msra.mxu2 %v389_v0  ;;  %v505_v47 = vld [vmem:[%s1849_s9] sm:$0x3] }
 0x339   :  { %v508_v52 = vperm.slane %v505_v47, 1 }
 0x33a   :  { %455 = vmatpush.msra.mxu3 %v409_v53 }
 0x33c   :  { %456 = vmatpush.msra.mxu3 %v408_v56 }
 0x33e   :  { %457 = vmatpush.msra.mxu3 %v407_v59 }
 0x33f   :  { %593 = vrot.lane.b32.xlu2 %v1236_v51, %s1007_s6 }
 0x340   :  { %458 = vmatpush.msra.mxu3 %v406_v62 }
 0x342   :  { %459 = vmatpush.msra.mxu3 %v405_v1 }
 0x39a   :  { %v305_v33 = vpop.xlane.xlu2 %304 }
 0x39b   :  { %v306_v36 = vcvt.f32.s32 %v305_v33  ;;  %v581_v33 = vld [vmem:[%s1848_s10 + $0xa0] sm:$0xff] }
 0x39d   :  { %v309_v39 = vadd.s32 %v308_v35, %v306_v36  ;;  %v580_v35 = vld [vmem:[%s1848_s10 + $0x98] sm:$0xff]  ;;  %v562_v36 = vld [vmem:[%s1848_s10 + $0x8] sm:$0xff] }
 0x39f   :  { %vm325_vm13 = vcmp.eq.s32.totalorder %v1321_v20, %v309_v39  ;;  %v578_v39 = vld [vmem:[%s1848_s10 + $0x88] sm:$0xff] }
 0x3a0   :  { %v1503_v46 = vsel %vm325_vm13, 1.0, %v1006_v45 }
 0x3a1   :  { %952 = vmatmul.msk.f32.vlgmr.msrb.gmra.mxu2 %vm226_vm0, %v1503_v46  ;;  %954 = vmatmul.msk.f32.vlgmr.msrb.gmra.mxu3 %vm226_vm0, %v1503_v46 }
 0x3a2   :  { %v320_v48 = vpop.xlane.xlu1 %319  ;;  %599 = vmatpush.msrb.mxu2 %v576_v2  ;;  %622 = vmatpush.msrb.mxu3 %v592_v4  ;;  %v471_v2 = vunpack.c.l.bf16 %v1678_v14  ;;  %v472_v4 = vunpack.c.h.bf16 %v1678_v14 }
 0x3a3   :  { %v321_v50 = vcvt.f32.s32 %v320_v48  ;;  %v528_v48 = vpop.f32.mrf.mxu0 }
 0x3a4   :  { %600 = vmatpush.msrb.mxu2 %v575_v5  ;;  %623 = vmatpush.msrb.mxu3 %v591_v8 }
 0x3a5   :  { %v324_v54 = vadd.s32 %v323_v49, %v321_v50  ;;  %v551_v49 = vpop.f32.mrf.mxu1  ;;  %v507_v50 = vperm.slane %v505_v47, 0 }
 0x3a6   :  { %601 = vmatpush.msrb.mxu2 %v574_v9  ;;  %624 = vmatpush.msrb.mxu3 %v590_v10  ;;  %v552_v59 = vadd.f32 %v551_v49, %v508_v52 }
 0x3a7   :  { %vm326_vm14 = vcmp.eq.s32.totalorder %v1321_v20, %v324_v54  ;;  %v529_v56 = vadd.f32 %v528_v48, %v507_v50 }
 0x3a8   :  { %v1535_v60 = vsel %vm326_vm14, 1.0, %v1006_v45  ;;  %602 = vmatpush.msrb.mxu2 %v573_v11  ;;  %625 = vmatpush.msrb.mxu3 %v589_v12  ;;  %v558_v62 = vmul.f32 %v552_v59, %v470_v57 }
 0x3a9   :  { %953 = vmatmul.msk.f32.gmra.mxu2 %vm226_vm0, %v1535_v60  ;;  %955 = vmatmul.msk.f32.gmra.mxu3 %vm226_vm0, %v1535_v60  ;;  %v970_v63 = vpack.i.bf16 %v1535_v60, %v1503_v46  ;;  %v835_v46 = vld [vmem:[%s1852_s12 + $0xf0] sm:$0xff]  ;;  %v818_v60 = vld [vmem:[%s1852_s12 + $0x68] sm:$0xff] }
 0x3aa   :  { %603 = vmatpush.msrb.mxu2 %v572_v13  ;;  %626 = vmatpush.msrb.mxu3 %v588_v17 }
 0x3ab   :  { %v531_v0 = vpop.f32.mrf.mxu0 }
 0x3ac   :  { %604 = vmatpush.msrb.mxu2 %v571_v18  ;;  %627 = vmatpush.msrb.mxu3 %v587_v21  ;;  %v594_v18 = vpop.permute.xlu2 %593 }
 0x3ad   :  { %v554_v1 = vpop.f32.mrf.mxu1 }
 0x3ae   :  { %605 = vmatpush.msrb.mxu2 %v570_v19  ;;  %628 = vmatpush.msrb.mxu3 %v586_v23 }
 0x3b0   :  { %606 = vmatpush.msrb.mxu2 %v569_v22  ;;  %629 = vmatpush.msrb.mxu3 %v585_v25  ;;  %v596_v25 = vpop.permute.xlu0 %595 }
 0x3b2   :  { %607 = vmatpush.msrb.mxu2 %v568_v24  ;;  %630 = vmatpush.msrb.mxu3 %v584_v27 }
 0x3b4   :  { %608 = vmatpush.msrb.mxu2 %v567_v26  ;;  %631 = vmatpush.msrb.mxu3 %v583_v29 }
 0x3b6   :  { %609 = vmatpush.msrb.mxu2 %v566_v28  ;;  %632 = vmatpush.msrb.mxu3 %v582_v31 }
 0x3b8   :  { %610 = vmatpush.msrb.mxu2 %v565_v30  ;;  %633 = vmatpush.msrb.mxu3 %v581_v33 }
 0x3ba   :  { %611 = vmatpush.msrb.mxu2 %v564_v32  ;;  %634 = vmatpush.msrb.mxu3 %v580_v35 }
 0x3bc   :  { %612 = vmatpush.msrb.mxu2 %v563_v34  ;;  %635 = vmatpush.msrb.mxu3 %v579_v37 }
 0x3be   :  { %613 = vmatpush.msrb.mxu2 %v562_v36  ;;  %636 = vmatpush.msrb.mxu3 %v578_v39 }
 0x3c0   :  { %614 = vmatpush.msrb.mxu2 %v561_v38  ;;  %637 = vmatpush.msrb.mxu3 %v577_v40 }
 0x424   :  { %v356_v41 = vpop.f32.mrf.mxu2  ;;  %v379_v42 = vpop.f32.mrf.mxu3 }
 0x425   :  { %v385_v44 = vmul.f32 %v356_v41, %v48_v6  ;;  %v386_v43 = vmul.f32 %v379_v42, %v49_v7  ;;  %v469_v7 = vunpack.c.l.bf16 %v1663_v55 }
 0x427   :  { %437 = vmatmul.f32.vlgmr.msra.gmra.mxu2 %v385_v44  ;;  %460 = vmatmul.f32.vlgmr.msra.gmra.mxu3 %v386_v43  ;;  %v557_v61 = vmul.f32 %v529_v56, %v469_v7 }
 0x42c   :  { %v359_v53 = vpop.f32.mrf.mxu2  ;;  %v382_v54 = vpop.f32.mrf.mxu3 }
 0x42d   :  { %v387_v3 = vmul.f32 %v359_v53, %v50_v15  ;;  %v388_v6 = vmul.f32 %v382_v54, %v51_v16  ;;  %v532_v15 = vadd.f32 %v531_v0, %v507_v50  ;;  %v555_v16 = vadd.f32 %v554_v1, %v508_v52 }
 0x42f   :  { %440 = vmatmul.f32.gmra.mxu2 %v387_v3  ;;  %463 = vmatmul.f32.gmra.mxu3 %v388_v6  ;;  %v559_v5 = vmul.f32 %v532_v15, %v471_v2  ;;  %v560_v8 = vmul.f32 %v555_v16, %v472_v4 }
 0x437   :  { %615 = vmatmul.f32.vlgmr.msrb.gmra.mxu2 %v557_v61  ;;  %638 = vmatmul.f32.vlgmr.msrb.gmra.mxu3 %v558_v62 }
 0x43f   :  { %618 = vmatmul.f32.gmra.mxu2 %v559_v5  ;;  %641 = vmatmul.f32.gmra.mxu3 %v560_v8 }
 0x4aa   :  { %v438_v9 = vpop.f32.mrf.mxu2  ;;  %v461_v10 = vpop.f32.mrf.mxu3 }
 0x4ab   :  { %v1686_v11 = vadd.f32 %v461_v10, %v438_v9 }
 0x4b2   :  { %v441_v12 = vpop.f32.mrf.mxu2  ;;  %v464_v13 = vpop.f32.mrf.mxu3 }
 0x4b3   :  { %v1688_v17 = vadd.f32 %v464_v13, %v441_v12 }
 0x4ba   :  { %v616_v19 = vpop.f32.mrf.mxu2  ;;  %v639_v21 = vpop.f32.mrf.mxu3 }
 0x4bb   :  { %v617_v22 = vadd.f32 %v616_v19, %v594_v18 }
 0x4bd   :  { %v640_v23 = vadd.f32 %v639_v21, %v617_v22 }
 0x4bf   :  { %v645_v24 = vsel %vm226_vm0, %v640_v23, -inf }
 0x4c0   :  { %646 = vmax.xlane.f32.xlu2 %v645_v24 }
 0x4c2   :  { %v619_v26 = vpop.f32.mrf.mxu2  ;;  %v642_v27 = vpop.f32.mrf.mxu3 }
 0x4c3   :  { %v620_v28 = vadd.f32 %v619_v26, %v596_v25 }
 0x4c5   :  { %v643_v29 = vadd.f32 %v642_v27, %v620_v28 }
 0x4c7   :  { %v648_v30 = vsel %vm226_vm0, %v643_v29, -inf }
 0x4c8   :  { %649 = vmax.xlane.f32.xlu1 %v648_v30 }
 0x4d8   :  { %695 = vrot.lane.b32.xlu2 %v1261_v58, %s1008_s2 }
 0x533   :  { %v647_v31 = vpop.xlane.xlu2 %646 }
 0x534   :  { %v651_v32 = vsub.f32 %v640_v23, %v647_v31  ;;  %v747_v31 = vld [vmem:[%s1851_s11] sm:$0xff] }
 0x535   :  { %770 = vmatpush.msra.mxu0 %v747_v31 }
 0x536   :  { %v653_v33 = vmul.f32 1.442695, %v651_v32  ;;  %v748_v32 = vld [vmem:[%s1851_s11 + $0x8] sm:$0xff] }
 0x537   :  { %793 = vmatpush.msra.mxu1 %v748_v32 }
 0x538   :  { %988 = vpow2.f32 %v653_v33 }
 0x53b   :  { %v650_v34 = vpop.xlane.xlu1 %649  ;;  %v696_v62 = vpop.permute.xlu2 %695 }
 0x53c   :  { %v652_v35 = vsub.f32 %v643_v29, %v650_v34 }
 0x53e   :  { %v989_v36 = vpop.eup %988  ;;  %v655_v37 = vmul.f32 1.442695, %v652_v35 }
 0x53f   :  { %v657_v38 = vsel %vm226_vm0, %v989_v36, 0.0 }
 0x540   :  { %990 = vpow2.f32 %v655_v37  ;;  %658 = vadd.xlane.f32.xlu0 %v657_v38 }
 0x546   :  { %v991_v39 = vpop.eup %990 }
 0x547   :  { %v660_v40 = vsel %vm226_vm0, %v991_v39, 0.0 }
 0x548   :  { %661 = vadd.xlane.f32.xlu1 %v660_v40  ;;  %v820_v40 = vld [vmem:[%s1852_s12 + $0x78] sm:$0xff] }
 0x549   :  { %837 = vmatpush.msrb.mxu0 %v820_v40 }
 0x561   :  { %693 = vrot.lane.b32.xlu1 %v1236_v51, %s1008_s2 }
 0x5b3   :  { %v659_v58 = vpop.xlane.xlu0 %658 }
 0x5b4   :  { %992 = vrcp.f32 %v659_v58  ;;  %v674_v51 = vand.u32 2147483648, %v659_v58  ;;  %vm668_vm3 = vweird.f32 %v659_v58  ;;  %v672_v59 = vand.u32 2147483647, %v659_v58 }
 0x5b6   :  { %v675_v16 = vor.u32 1.1754944e-38, %v674_v51  ;;  %vm673_vm7 = vcmp.eq.f32.partialorder %v672_v59, 8.507059e+37  ;;  %v830_v59 = vld [vmem:[%s1852_s12 + $0xc8] sm:$0xff] }
 0x5ba   :  { %v993_v41 = vpop.eup %992 }
 0x5bb   :  { %v662_v42 = vpop.xlane.xlu1 %661  ;;  %v664_v44 = vmul.f32 %v993_v41, %v659_v58  ;;  %vm669_vm1 = vweird.f32 %v993_v41  ;;  %v836_v58 = vld [vmem:[%s1852_s12 + $0xf8] sm:$0xff] }
 0x5bc   :  { %994 = vrcp.f32 %v662_v42  ;;  %v689_v52 = vand.u32 2147483648, %v662_v42  ;;  %v687_v54 = vand.u32 2147483647, %v662_v42  ;;  %vm683_vm2 = vweird.f32 %v662_v42  ;;  %vm670_vm6 = vmor %vm668_vm3, %vm669_vm1  ;;  %860 = vmatpush.msrb.mxu1 %v836_v58 }
 0x5bd   :  { %v665_v43 = vsub.f32 1.0, %v664_v44  ;;  %vm935_vm1 = vcmask 261120   ;;  %vm938_vm3 = vcmask 326656  }
 0x5be   :  { %v690_v56 = vor.u32 1.1754944e-38, %v689_v52  ;;  %vm688_vm5 = vcmp.eq.f32.partialorder %v687_v54, 8.507059e+37  ;;  %861 = vmatpush.msrb.mxu1 %v835_v46  ;;  %v832_v52 = vld [vmem:[%s1852_s12 + $0xd8] sm:$0xff] }
 0x5bf   :  { %v666_v49 = vmul.f32 %v993_v41, %v665_v43  ;;  %v817_v43 = vld [vmem:[%s1852_s12 + $0x60] sm:$0xff] }
 0x5c1   :  { %v667_v3 = vadd.f32 %v993_v41, %v666_v49 }
 0x5c2   :  { %v995_v47 = vpop.eup %994 }
 0x5c3   :  { %v679_v48 = vmul.f32 %v995_v47, %v662_v42  ;;  %vm684_vm15 = vweird.f32 %v995_v47  ;;  %v671_v1 = vsel %vm670_vm6, %v993_v41, %v667_v3  ;;  %v819_v41 = vld [vmem:[%s1852_s12 + $0x70] sm:$0xff] }
 0x5c4   :  { %vm685_vm4 = vmor %vm683_vm2, %vm684_vm15  ;;  %v676_v8 = vsel %vm673_vm7, %v675_v16, %v671_v1  ;;  %838 = vmatpush.msrb.mxu0 %v819_v41  ;;  %v815_v3 = vld [vmem:[%s1852_s12 + $0x50] sm:$0xff]  ;;  %v813_v1 = vld [vmem:[%s1852_s12 + $0x40] sm:$0xff] }
 0x5c5   :  { %v680_v50 = vsub.f32 1.0, %v679_v48  ;;  %v677_v10 = vmul.f32 %v989_v36, %v676_v8  ;;  %v828_v8 = vld [vmem:[%s1852_s12 + $0xb8] sm:$0xff] }
 0x5c6   :  { %839 = vmatpush.msrb.mxu0 %v818_v60 }
 0x5c7   :  { %v681_v53 = vmul.f32 %v995_v47, %v680_v50  ;;  %v816_v50 = vld [vmem:[%s1852_s12 + $0x58] sm:$0xff] }
 0x5c8   :  { %840 = vmatpush.msrb.mxu0 %v817_v43 }
 0x5c9   :  { %v682_v6 = vadd.f32 %v995_v47, %v681_v53 }
 0x5ca   :  { %841 = vmatpush.msrb.mxu0 %v816_v50 }
 0x5cb   :  { %v686_v61 = vsel %vm685_vm4, %v995_v47, %v682_v6  ;;  %v833_v47 = vld [vmem:[%s1852_s12 + $0xe0] sm:$0xff]  ;;  %v831_v6 = vld [vmem:[%s1852_s12 + $0xd0] sm:$0xff]  ;;  %vm941_vm4 = vcmask 392192  }
 0x5cc   :  { %v691_v0 = vsel %vm688_vm5, %v690_v56, %v686_v61  ;;  %v814_v56 = vld [vmem:[%s1852_s12 + $0x48] sm:$0xff]  ;;  %842 = vmatpush.msrb.mxu0 %v815_v3 }
 0x5cd   :  { %v692_v15 = vmul.f32 %v991_v39, %v691_v0 }
 0x5ce   :  { %843 = vmatpush.msrb.mxu0 %v814_v56 }
 0x5cf   :  { %v700_v5 = vadd.f32 %v696_v62, %v692_v15  ;;  %v829_v15 = vld [vmem:[%s1852_s12 + $0xc0] sm:$0xff] }
 0x5d0   :  { %844 = vmatpush.msrb.mxu0 %v813_v1 }
 0x5d1   :  { %v704_v9 = vsel %vm226_vm0, %v700_v5, -inf }
 0x5d2   :  { %705 = vmax.xlane.f32.xlu0 %v704_v9  ;;  %v811_v9 = vld [vmem:[%s1852_s12 + $0x30] sm:$0xff] }
 0x5d3   :  { %v694_v12 = vpop.permute.xlu1 %693 }
 0x5d4   :  { %v699_v13 = vadd.f32 %v694_v12, %v677_v10  ;;  %v827_v10 = vld [vmem:[%s1852_s12 + $0xb0] sm:$0xff] }
 0x5d6   :  { %v701_v18 = vsel %vm226_vm0, %v699_v13, -inf }
 0x5d7   :  { %702 = vmax.xlane.f32.xlu1 %v701_v18  ;;  %v826_v18 = vld [vmem:[%s1852_s12 + $0xa8] sm:$0xff] }
 0x645   :  { %v706_v19 = vpop.xlane.xlu0 %705 }
 0x646   :  { %vm708_vm8 = vcmp.eq.f32.partialorder %v700_v5, %v706_v19  ;;  %v812_v5 = vld [vmem:[%s1852_s12 + $0x38] sm:$0xff]  ;;  %v825_v19 = vld [vmem:[%s1852_s12 + $0xa0] sm:$0xff] }
 0x647   :  { %v710_v21 = vsel %vm708_vm8, %v1321_v20, 8  ;;  %845 = vmatpush.msrb.mxu0 %v812_v5 }
 0x648   :  { %v726_v22 = vsel %vm226_vm0, %v710_v21, 2147483647  ;;  %v808_v21 = vld [vmem:[%s1852_s12 + $0x18] sm:$0xff] }
 0x649   :  { %v728_v23 = vshra.s32 %v726_v22, 16  ;;  %v727_v37 = vand.u32 65535, %v726_v22  ;;  %846 = vmatpush.msrb.mxu0 %v811_v9  ;;  %v824_v22 = vld [vmem:[%s1852_s12 + $0x98] sm:$0xff] }
 0x64a   :  { %v703_v24 = vpop.xlane.xlu1 %702 }
 0x64b   :  { %vm707_vm9 = vcmp.eq.f32.partialorder %v699_v13, %v703_v24  ;;  %v730_v25 = vcvt.s32.f32 %v728_v23  ;;  %v729_v38 = vcvt.s32.f32 %v727_v37  ;;  %v807_v23 = vld [vmem:[%s1852_s12 + $0x10] sm:$0xff] }
 0x64c   :  { %v709_v26 = vsel %vm707_vm9, %v1321_v20, 8  ;;  %v823_v24 = vld [vmem:[%s1852_s12 + $0x90] sm:$0xff] }
 0x64d   :  { %v711_v27 = vsel %vm226_vm0, %v709_v26, 2147483647  ;;  %731 = vmin.xlane.f32.xlu2 %v730_v25  ;;  %v822_v26 = vld [vmem:[%s1852_s12 + $0x88] sm:$0xff] }
 0x64e   :  { %v713_v28 = vshra.s32 %v711_v27, 16  ;;  %v712_v30 = vand.u32 65535, %v711_v27  ;;  %v805_v27 = vld [vmem:[%s1852_s12] sm:$0xff] }
 0x650   :  { %v715_v29 = vcvt.s32.f32 %v713_v28  ;;  %v714_v34 = vcvt.s32.f32 %v712_v30  ;;  %v821_v28 = vld [vmem:[%s1852_s12 + $0x80] sm:$0xff] }
 0x652   :  { %716 = vmin.xlane.f32.xlu0 %v715_v29 }
 0x6c0   :  { %v732_v36 = vpop.xlane.xlu2 %731 }
 0x6c1   :  { %vm733_vm11 = vcmp.eq.f32.partialorder %v730_v25, %v732_v36  ;;  %v738_v54 = vcvt.f32.s32 %v732_v36  ;;  %v806_v25 = vld [vmem:[%s1852_s12 + $0x8] sm:$0xff] }
 0x6c2   :  { %v734_v39 = vsel %vm733_vm11, %v729_v38, inf }
 0x6c3   :  { %v739_v62 = vshll.u32 %v738_v54, 16 }
 0x6c5   :  { %v717_v33 = vpop.xlane.xlu0 %716 }
 0x6c6   :  { %vm718_vm10 = vcmp.eq.f32.partialorder %v715_v29, %v717_v33  ;;  %v723_v42 = vcvt.f32.s32 %v717_v33 }
 0x6c7   :  { %v719_v35 = vsel %vm718_vm10, %v714_v34, inf }
 0x6c8   :  { %720 = vmin.xlane.f32.xlu0 %v719_v35  ;;  %v724_v48 = vshll.u32 %v723_v42, 16 }
 0x6d0   :  { %735 = vmin.xlane.f32.xlu0 %v734_v39 }
 0x6e4   :  { %971 = vrot.lane.b32.xlu0 %v970_v63, %s1009_s16  ;;  %v834_v63 = vld [vmem:[%s1852_s12 + $0xe8] sm:$0xff] }
 0x6e5   :  { %862 = vmatpush.msrb.mxu1 %v834_v63 }
 0x6e7   :  { %863 = vmatpush.msrb.mxu1 %v833_v47 }
 0x6e9   :  { %864 = vmatpush.msrb.mxu1 %v832_v52 }
 0x6eb   :  { %865 = vmatpush.msrb.mxu1 %v831_v6 }
 0x6ed   :  { %866 = vmatpush.msrb.mxu1 %v830_v59 }
 0x6ef   :  { %867 = vmatpush.msrb.mxu1 %v829_v15 }
 0x6f1   :  { %868 = vmatpush.msrb.mxu1 %v828_v8 }
 0x6f3   :  { %869 = vmatpush.msrb.mxu1 %v827_v10 }
 0x6f5   :  { %870 = vmatpush.msrb.mxu1 %v826_v18 }
 0x6f7   :  { %871 = vmatpush.msrb.mxu1 %v825_v19 }
 0x6f9   :  { %872 = vmatpush.msrb.mxu1 %v824_v22 }
 0x6fb   :  { %873 = vmatpush.msrb.mxu1 %v823_v24 }
 0x6fd   :  { %874 = vmatpush.msrb.mxu1 %v822_v26 }
 0x6ff   :  { %875 = vmatpush.msrb.mxu1 %v821_v28 }
 0x73b   :  { %v721_v44 = vpop.xlane.xlu0 %720 }
 0x73c   :  { %v722_v49 = vcvt.f32.s32 %v721_v44 }
 0x73e   :  { %v725_v53 = vadd.s32 %v724_v48, %v722_v49 }
 0x740   :  { %vm741_vm12 = vcmp.eq.s32.totalorder %v1321_v20, %v725_v53 }
 0x741   :  { %v956_v51 = vsel %vm741_vm12, 1.0, %v1006_v45 }
 0x742   :  { %958 = vmatmul.msk.f32.vlgmr.msra.gmra.mxu0 %vm226_vm0, %v956_v51  ;;  %960 = vmatmul.msk.f32.vlgmr.msra.gmra.mxu1 %vm226_vm0, %v956_v51 }
 0x743   :  { %v736_v61 = vpop.xlane.xlu0 %735 }
 0x744   :  { %v737_v0 = vcvt.f32.s32 %v736_v61 }
 0x746   :  { %v740_v16 = vadd.s32 %v739_v62, %v737_v0 }
 0x748   :  { %vm742_vm13 = vcmp.eq.s32.totalorder %v1321_v20, %v740_v16  ;;  %v810_v20 = vld [vmem:[%s1852_s12 + $0x28] sm:$0xff] }
 0x749   :  { %v957_v12 = vsel %vm742_vm13, 1.0, %v1006_v45  ;;  %v809_v45 = vld [vmem:[%s1852_s12 + $0x20] sm:$0xff]  ;;  %847 = vmatpush.msrb.mxu0 %v810_v20 }
 0x74a   :  { %959 = vmatmul.msk.f32.gmra.mxu0 %vm226_vm0, %v957_v12  ;;  %961 = vmatmul.msk.f32.gmra.mxu1 %vm226_vm0, %v957_v12  ;;  %v975_v13 = vpack.i.bf16 %v957_v12, %v956_v51 }
 0x74b   :  { %848 = vmatpush.msrb.mxu0 %v809_v45 }
 0x74c   :  { %976 = vrot.lane.b32.xlu1 %v975_v13, %s1008_s2 }
 0x74d   :  { %849 = vmatpush.msrb.mxu0 %v808_v21 }
 0x74f   :  { %850 = vmatpush.msrb.mxu0 %v807_v23 }
 0x751   :  { %851 = vmatpush.msrb.mxu0 %v806_v25 }
 0x753   :  { %852 = vmatpush.msrb.mxu0 %v805_v27 }
 0x7be   :  { %v977_v49 = vpop.permute.xlu1 %976 }
 0x7bf   :  { %v772_v29 = vpop.f32.mrf.mxu0  ;;  %v795_v30 = vpop.f32.mrf.mxu1  ;;  %v978_v6 = vunpack.i.l.bf16 %v977_v49  ;;  %v979_v10 = vunpack.i.h.bf16 %v977_v49 }
 0x7c0   :  { %v801_v31 = vmul.f32 %v772_v29, %v469_v7  ;;  %v802_v32 = vmul.f32 %v795_v30, %v470_v57 }
 0x7c2   :  { %853 = vmatmul.f32.vlgmr.msrb.gmra.mxu0 %v801_v31  ;;  %876 = vmatmul.f32.vlgmr.msrb.gmra.mxu1 %v802_v32 }
 0x7c7   :  { %v775_v33 = vpop.f32.mrf.mxu0  ;;  %v798_v34 = vpop.f32.mrf.mxu1 }
 0x7c8   :  { %v803_v35 = vmul.f32 %v775_v33, %v471_v2  ;;  %v804_v36 = vmul.f32 %v798_v34, %v472_v4 }
 0x7ca   :  { %856 = vmatmul.f32.gmra.mxu0 %v803_v35  ;;  %879 = vmatmul.f32.gmra.mxu1 %v804_v36 }
 0x83f   :  { %v854_v37 = vpop.f32.mrf.mxu0  ;;  %v877_v38 = vpop.f32.mrf.mxu1 }
 0x840   :  { %v878_v39 = vadd.f32 %v877_v38, %v854_v37 }
 0x842   :  { %v883_v7 = vmul.f32 %v878_v39, %v1686_v11  ;;  %v972_v11 = vpop.permute.xlu0 %971 }
 0x843   :  { %v973_v52 = vunpack.i.l.bf16 %v972_v11  ;;  %v974_v8 = vunpack.i.h.bf16 %v972_v11 }
 0x844   :  { %v962_v40 = vmul.f32 -1.442695, %v883_v7 }
 0x846   :  { %996 = vpow2.f32 %v962_v40 }
 0x847   :  { %v857_v55 = vpop.f32.mrf.mxu0  ;;  %v880_v57 = vpop.f32.mrf.mxu1 }
 0x848   :  { %v881_v58 = vadd.f32 %v880_v57, %v857_v55 }
 0x84a   :  { %v884_v41 = vmul.f32 %v881_v58, %v1688_v17 }
 0x84c   :  { %v997_v42 = vpop.eup %996  ;;  %v963_v46 = vmul.f32 -1.442695, %v884_v41 }
 0x84d   :  { %v891_v2 = vadd.f32 1.0, %v997_v42 }
 0x84e   :  { %998 = vpow2.f32 %v963_v46 }
 0x84f   :  { %1000 = vrcp.f32 %v891_v2  ;;  %v904_v43 = vand.u32 2147483648, %v891_v2  ;;  %v902_v48 = vand.u32 2147483647, %v891_v2  ;;  %vm898_vm14 = vweird.f32 %v891_v2 }
 0x851   :  { %v905_v53 = vor.u32 1.1754944e-38, %v904_v43  ;;  %vm903_vm2 = vcmp.eq.f32.partialorder %v902_v48, 8.507059e+37 }
 0x854   :  { %v999_v14 = vpop.eup %998 }
 0x855   :  { %v1001_v4 = vpop.eup %1000  ;;  %v892_v60 = vadd.f32 1.0, %v999_v14 }
 0x856   :  { %v894_v63 = vmul.f32 %v1001_v4, %v891_v2  ;;  %vm899_vm0 = vweird.f32 %v1001_v4 }
 0x857   :  { %1002 = vrcp.f32 %v892_v60  ;;  %vm900_vm15 = vmor %vm898_vm14, %vm899_vm0  ;;  %v919_v62 = vand.u32 2147483648, %v892_v60  ;;  %v917_v15 = vand.u32 2147483647, %v892_v60  ;;  %vm913_vm6 = vweird.f32 %v892_v60 }
 0x858   :  { %v895_v44 = vsub.f32 1.0, %v894_v63 }
 0x859   :  { %v920_v5 = vor.u32 1.1754944e-38, %v919_v62  ;;  %vm918_vm8 = vcmp.eq.f32.partialorder %v917_v15, 8.507059e+37 }
 0x85a   :  { %v896_v47 = vmul.f32 %v1001_v4, %v895_v44 }
 0x85c   :  { %v897_v50 = vadd.f32 %v1001_v4, %v896_v47 }
 0x85d   :  { %v1003_v17 = vpop.eup %1002 }
 0x85e   :  { %v901_v54 = vsel %vm900_vm15, %v1001_v4, %v897_v50  ;;  %v909_v3 = vmul.f32 %v1003_v17, %v892_v60  ;;  %vm914_vm5 = vweird.f32 %v1003_v17 }
 0x85f   :  { %v906_v51 = vsel %vm903_vm2, %v905_v53, %v901_v54  ;;  %vm915_vm7 = vmor %vm913_vm6, %vm914_vm5 }
 0x860   :  { %v936_v56 = vsel %vm935_vm1, %v906_v51, %v973_v52  ;;  %v910_v59 = vsub.f32 1.0, %v909_v3 }
 0x861   :  { %v939_v61 = vsel %vm938_vm3, %v936_v56, %v978_v6 }
 0x862   :  { %v942_v0 = vsel %vm941_vm4, %v939_v61, 0.0  ;;  %v911_v1 = vmul.f32 %v1003_v17, %v910_v59 }
 0x863   :  { %944 = vst [vmem:[%s1853_s13] sm:$0xff] %v942_v0 }
 0x864   :  { %v912_v16 = vadd.f32 %v1003_v17, %v911_v1 }
 0x866   :  { %v916_v9 = vsel %vm915_vm7, %v1003_v17, %v912_v16 }
 0x867   :  { %v921_v12 = vsel %vm918_vm8, %v920_v5, %v916_v9 }
 0x868   :  { %v937_v13 = vsel %vm935_vm1, %v921_v12, %v974_v8 }
 0x869   :  { %v940_v20 = vsel %vm938_vm3, %v937_v13, %v979_v10 }
 0x86a   :  { %v943_v18 = vsel %vm941_vm4, %v940_v20, 0.0 }
 0x86b   :  { %945 = vst [vmem:[%s1853_s13 + $0x8] sm:$0xff] %v943_v18 }

</bundles_post_ra>
